<compile_context>
chip_gen: v7x
topology: tpu7x:2x2x1
jax: 0.10.0
libtpu: 0.0.40
codegen_flags: <defaults>
</compile_context>

<pallas_src>
import functools

import jax
import jax.numpy as jnp
from jax.experimental import pallas as pl
from jax.experimental.pallas import tpu as pltpu

LANES = 128  # lane-dense output width for every matmul


# ----------------------------------------------------------------------------
# Pallas kernels
# ----------------------------------------------------------------------------
def _matmul_bias_relu_kernel(a_ref, w_ref, b_ref, o_ref):
    # a: (tm, K) bf16, w: (K, 128) bf16 (resident), b: (1, 128) f32 (resident)
    acc = jnp.dot(a_ref[...], w_ref[...], preferred_element_type=jnp.float32)
    o_ref[...] = jnp.maximum(acc + b_ref[...], 0.0).astype(o_ref.dtype)


def _fused_head_kernel(x_ref, w1_ref, b1_ref, w2_ref, b2_ref, w3_ref, b3_ref,
                       labels_ref, loss_ref, pred_ref, *, num_classes, batch):
    # x: (B, 256) bf16; w*: (*, 128) bf16 (K rows of w2/w3 zero-padded);
    # b*: (1, 128) f32; labels: (B, 1) int32.
    h = jnp.dot(x_ref[...], w1_ref[...], preferred_element_type=jnp.float32)
    h = jnp.maximum(h + b1_ref[...], 0.0).astype(jnp.bfloat16)
    h = jnp.dot(h, w2_ref[...], preferred_element_type=jnp.float32)
    h = jnp.maximum(h + b2_ref[...], 0.0).astype(jnp.bfloat16)
    logits = jnp.dot(h, w3_ref[...], preferred_element_type=jnp.float32)
    logits = logits + b3_ref[...]                                   # (B, 128)

    B, Np = logits.shape
    col = jax.lax.broadcasted_iota(jnp.int32, (B, Np), 1)
    valid = col < num_classes
    masked = jnp.where(valid, logits, jnp.float32(-1e30))           # kill pad cols

    # cross entropy, mean reduction (matches nn.CrossEntropyLoss())
    m = jnp.max(masked, axis=-1, keepdims=True)                     # (B, 1)
    lse = m + jnp.log(jnp.sum(jnp.exp(masked - m), axis=-1, keepdims=True))
    labels = labels_ref[...]                                        # (B, 1)
    true_logit = jnp.sum(jnp.where(col == labels, masked, 0.0),
                         axis=-1, keepdims=True)
    per_example = lse - true_logit                                  # (B, 1)
    loss_ref[...] = jnp.sum(per_example, axis=0, keepdims=True) * (1.0 / batch)

    # argmax over real classes (first occurrence on ties)
    pred = jnp.min(jnp.where(masked == m, col, Np), axis=-1, keepdims=True)
    pred_ref[...] = pred.astype(jnp.int32)


# ----------------------------------------------------------------------------
# Pallas wrappers
# ----------------------------------------------------------------------------
def _images_per_block(batch, rows_per_image, target_rows=1024):
    ib = max(1, min(batch, max(1, target_rows // rows_per_image)))
    while batch % ib:
        ib -= 1
    return ib


def conv_matmul(patches, w, b, *, rows_per_image, batch):
    """(patches @ w + b) then ReLU.  patches: (B*rows, K) bf16, w: (K,128) bf16,
    b: (1,128) f32.  M-tiled grid, weights/bias resident across the grid."""
    M, K = patches.shape
    N = w.shape[1]
    ib = _images_per_block(batch, rows_per_image)
    tm = ib * rows_per_image
    return pl.pallas_call(
        _matmul_bias_relu_kernel,
        out_shape=jax.ShapeDtypeStruct((M, N), jnp.float32),
        grid=(batch // ib,),
        in_specs=[
            pl.BlockSpec((tm, K), lambda i: (i, 0)),
            pl.BlockSpec((K, N), lambda i: (0, 0)),
            pl.BlockSpec((1, N), lambda i: (0, 0)),
        ],
        out_specs=pl.BlockSpec((tm, N), lambda i: (i, 0)),
        compiler_params=pltpu.CompilerParams(
            dimension_semantics=("parallel",)),
    )(patches, w, b)


def fused_head(x, w1, b1, w2, b2, w3, b3, labels, *, num_classes=10):
    """fc1->relu->fc2->relu->fc3->cross-entropy(mean)+argmax in one kernel."""
    B = x.shape[0]
    vmem = pl.BlockSpec(memory_space=pltpu.MemorySpace.VMEM)
    loss, preds = pl.pallas_call(
        functools.partial(_fused_head_kernel, num_classes=num_classes, batch=B),
        out_shape=(
            jax.ShapeDtypeStruct((1, 1), jnp.float32),
            jax.ShapeDtypeStruct((B, 1), jnp.int32),
        ),
        in_specs=[vmem] * 8,
        out_specs=(vmem, vmem),
    )(x, w1, b1, w2, b2, w3, b3, labels.reshape(B, 1).astype(jnp.int32))
    return loss[0, 0], preds


# ----------------------------------------------------------------------------
# JAX glue: NHWC im2col, max-pool
# ----------------------------------------------------------------------------
def im2col_nhwc(x, k):
    """Valid-padding stride-1 patches from NHWC input; column order (kh, kw, c)
    (matched by the weight permutation in prepare_params).  Returns bf16."""
    B, H, W, C = x.shape
    Ho, Wo = H - k + 1, W - k + 1
    slices = [x[:, i:i + Ho, j:j + Wo, :] for i in range(k) for j in range(k)]
    patches = jnp.stack(slices, axis=3)                 # (B, Ho, Wo, k*k, C)
    return patches.reshape(B * Ho * Wo, k * k * C).astype(jnp.bfloat16)


def maxpool2x2_nhwc(x):
    B, H, W, C = x.shape
    return x.reshape(B, H // 2, 2, W // 2, 2, C).max(axis=(2, 4))


# ----------------------------------------------------------------------------
# Parameters
# ----------------------------------------------------------------------------
def init_params(key):
    ks = jax.random.split(key, 10)

    def _w(k, shape, fan_in):
        bound = 1.0 / jnp.sqrt(fan_in)
        return jax.random.uniform(k, shape, jnp.float32, -bound, bound)

    return {
        "conv1_w": _w(ks[0], (6, 1, 5, 5), 1 * 5 * 5),
        "conv1_b": _w(ks[1], (6,), 1 * 5 * 5),
        "conv2_w": _w(ks[2], (16, 6, 5, 5), 6 * 5 * 5),
        "conv2_b": _w(ks[3], (16,), 6 * 5 * 5),
        "fc1_w": _w(ks[4], (120, 256), 256),
        "fc1_b": _w(ks[5], (120,), 256),
        "fc2_w": _w(ks[6], (84, 120), 120),
        "fc2_b": _w(ks[7], (84,), 120),
        "fc3_w": _w(ks[8], (10, 84), 84),
        "fc3_b": _w(ks[9], (10,), 84),
    }


def prepare_params(params):
    """One-time layout prep (outside jit): transpose/permute, zero-pad N (and
    the K rows fed by padded activations) to 128 lanes, cast weights to bf16."""

    def pad_n(w2d):                       # (K, N) -> (K, 128), zero pad cols
        K, N = w2d.shape
        return jnp.pad(w2d, ((0, 0), (0, LANES - N))).astype(jnp.bfloat16)

    def pad_bias(b):                      # (N,) -> (1, 128) f32
        return jnp.pad(b, (0, LANES - b.shape[0])).reshape(1, LANES).astype(jnp.float32)

    # conv weights: (Cout, Cin, kh, kw) -> rows ordered (kh, kw, cin)
    w1 = params["conv1_w"].transpose(2, 3, 1, 0).reshape(25, 6)        # (25, 6)
    w2 = params["conv2_w"].transpose(2, 3, 1, 0).reshape(150, 16)      # (150, 16)

    # fc1: PyTorch flattens NCHW (c,h,w); our activations flatten NHWC (h,w,c).
    fc1 = params["fc1_w"].reshape(120, 16, 4, 4).transpose(0, 2, 3, 1) \
                         .reshape(120, 256).T                          # (256, 120)
    fc2 = jnp.pad(params["fc2_w"].T, ((0, LANES - 120), (0, 0)))       # (128, 84)
    fc3 = jnp.pad(params["fc3_w"].T, ((0, LANES - 84), (0, 0)))        # (128, 10)

    return {
        "w1": pad_n(w1), "b1": pad_bias(params["conv1_b"]),
        "w2": pad_n(w2), "b2": pad_bias(params["conv2_b"]),
        "fw1": pad_n(fc1), "fb1": pad_bias(params["fc1_b"]),
        "fw2": pad_n(fc2), "fb2": pad_bias(params["fc2_b"]),
        "fw3": pad_n(fc3), "fb3": pad_bias(params["fc3_b"]),
    }


# ----------------------------------------------------------------------------
# Forward
# ----------------------------------------------------------------------------
def my_model_forward(prep, x, labels):
    """x: (B, 1, 28, 28) f32 NCHW, labels: (B,) int32.
    Returns ({'y_pred': (B,1) i32, 'y_true': (B,1) i32}, loss scalar)."""
    B = x.shape[0]
    x = x.reshape(B, 28, 28, 1)          # C==1: NCHW -> NHWC is a pure reshape

    # conv1 -> relu (fused) -> pool, all in NHWC
    p1 = im2col_nhwc(x, 5)                                            # (B*576, 25) bf16
    o1 = conv_matmul(p1, prep["w1"], prep["b1"],
                     rows_per_image=576, batch=B)                     # (B*576, 128) f32
    h = maxpool2x2_nhwc(o1.reshape(B, 24, 24, LANES)[..., :6])        # (B,12,12,6)

    # conv2 -> relu (fused) -> pool
    p2 = im2col_nhwc(h, 5)                                            # (B*64, 150) bf16
    o2 = conv_matmul(p2, prep["w2"], prep["b2"],
                     rows_per_image=64, batch=B)                      # (B*64, 128) f32
    h = maxpool2x2_nhwc(o2.reshape(B, 8, 8, LANES)[..., :16])         # (B,4,4,16)

    # fused FC head + cross-entropy(mean) + argmax (single Pallas call)
    flat = h.reshape(B, 256).astype(jnp.bfloat16)
    loss, preds = fused_head(flat, prep["fw1"], prep["fb1"],
                             prep["fw2"], prep["fb2"],
                             prep["fw3"], prep["fb3"], labels)

    out = {"y_pred": preds, "y_true": labels.reshape(B, 1).astype(jnp.int32)}
    return out, loss


if __name__ == "__main__":
    key = jax.random.PRNGKey(0)
    k_params, k_x, k_lbl = jax.random.split(key, 3)

    params = init_params(k_params)
    prep = prepare_params(params)        # one-time layout prep, outside jit

    # fc1 expects 16*4*4 features -> spatial input must be 28x28 (LeNet).
    x = jax.random.normal(k_x, (2, 1, 28, 28), dtype=jnp.float32)
    labels = jax.random.randint(k_lbl, (2,), 0, 10, dtype=jnp.int32)

    fwd = jax.jit(my_model_forward)
    out, loss = fwd(prep, x, labels)
    jax.block_until_ready((out, loss))

    assert out["y_pred"].shape == (2, 1) and out["y_true"].shape == (2, 1)
    assert loss.shape == ()
    assert bool(jnp.isfinite(loss))
    assert bool(jnp.all((out["y_pred"] >= 0) & (out["y_pred"] < 10)))
    print("KERNEL_OK")
</pallas_src>

<mosaic_0001>
module attributes {stable_mosaic.version = 11 : i64} {
  func.func @_matmul_bias_relu_kernel(%arg0: i32, %arg1: memref<576x25xbf16, #tpu.memory_space<vmem>>, %arg2: memref<25x128xbf16, #tpu.memory_space<vmem>>, %arg3: memref<1x128xf32, #tpu.memory_space<vmem>>, %arg4: memref<576x128xf32, #tpu.memory_space<vmem>>) attributes {dimension_semantics = [#tpu.dimension_semantics<parallel>], iteration_bounds = array<i64: 2>, scalar_prefetch = 0 : i64, scratch_operands = 0 : i64, tpu.core_type = #tpu.core_type<tc>, window_params = [{transform_indices = @transform_0, window_bounds = array<i64: 576, 25>}, {pipeline_mode = #tpu.pipeline_mode<synchronous>, transform_indices = @transform_1, window_bounds = array<i64: 25, 128>}, {pipeline_mode = #tpu.pipeline_mode<synchronous>, transform_indices = @transform_2, window_bounds = array<i64: 1, 128>}, {transform_indices = @transform_3, window_bounds = array<i64: 576, 128>}]} {
    %c0 = arith.constant 0 : index
    %c0_0 = arith.constant 0 : index
    %0 = vector.load %arg1[%c0, %c0_0] : memref<576x25xbf16, #tpu.memory_space<vmem>>, vector<576x25xbf16>
    %c0_1 = arith.constant 0 : index
    %c0_2 = arith.constant 0 : index
    %1 = vector.load %arg2[%c0_1, %c0_2] : memref<25x128xbf16, #tpu.memory_space<vmem>>, vector<25x128xbf16>
    %cst = arith.constant dense<0.000000e+00> : vector<576x128xf32>
    %2 = tpu.matmul %0, %1, %cst {dimension_numbers = #tpu.dot_dimension_numbers<[1], [0], [0], [1], [0, 0, 1, 1], [], []>} : vector<576x25xbf16>, vector<25x128xbf16>, vector<576x128xf32> -> vector<576x128xf32>
    %c0_3 = arith.constant 0 : index
    %c0_4 = arith.constant 0 : index
    %3 = vector.load %arg3[%c0_3, %c0_4] : memref<1x128xf32, #tpu.memory_space<vmem>>, vector<1x128xf32>
    %4 = vector.broadcast %3 : vector<1x128xf32> to vector<576x128xf32>
    %5 = arith.addf %2, %4 : vector<576x128xf32>
    %cst_5 = arith.constant 0.000000e+00 : f32
    %6 = vector.broadcast %cst_5 : f32 to vector<576x128xf32>
    %7 = arith.maximumf %5, %6 : vector<576x128xf32>
    %c0_6 = arith.constant 0 : index
    %c0_7 = arith.constant 0 : index
    %8 = vector.load %arg4[%c0_6, %c0_7] : memref<576x128xf32, #tpu.memory_space<vmem>>, vector<576x128xf32>
    tpu.vector_store %arg4[%c0_6, %c0_7], %7 {strides = array<i32>} : memref<576x128xf32, #tpu.memory_space<vmem>>, vector<576x128xf32>,
    return
  }
  func.func @transform_0(%arg0: i32) -> (i32, i32) {
    %c0_i32 = arith.constant 0 : i32
    %c0_i32_0 = arith.constant 0 : i32
    return %arg0, %c0_i32 : i32, i32
  }
  func.func @transform_1(%arg0: i32) -> (i32, i32) {
    %c0_i32 = arith.constant 0 : i32
    %c0_i32_0 = arith.constant 0 : i32
    %c0_i32_1 = arith.constant 0 : i32
    return %c0_i32, %c0_i32_0 : i32, i32
  }
  func.func @transform_2(%arg0: i32) -> (i32, i32) {
    %c0_i32 = arith.constant 0 : i32
    %c0_i32_0 = arith.constant 0 : i32
    %c0_i32_1 = arith.constant 0 : i32
    return %c0_i32, %c0_i32_0 : i32, i32
  }
  func.func @transform_3(%arg0: i32) -> (i32, i32) {
    %c0_i32 = arith.constant 0 : i32
    %c0_i32_0 = arith.constant 0 : i32
    return %arg0, %c0_i32 : i32, i32
  }
}

module attributes {stable_mosaic.version = 11 : i64} {
  func.func @_matmul_bias_relu_kernel(%arg0: i32, %arg1: memref<128x150xbf16, #tpu.memory_space<vmem>>, %arg2: memref<150x128xbf16, #tpu.memory_space<vmem>>, %arg3: memref<1x128xf32, #tpu.memory_space<vmem>>, %arg4: memref<128x128xf32, #tpu.memory_space<vmem>>) attributes {dimension_semantics = [#tpu.dimension_semantics<parallel>], iteration_bounds = array<i64: 1>, scalar_prefetch = 0 : i64, scratch_operands = 0 : i64, tpu.core_type = #tpu.core_type<tc>, window_params = [{transform_indices = @transform_0, window_bounds = array<i64: 128, 150>}, {pipeline_mode = #tpu.pipeline_mode<synchronous>, transform_indices = @transform_1, window_bounds = array<i64: 150, 128>}, {pipeline_mode = #tpu.pipeline_mode<synchronous>, transform_indices = @transform_2, window_bounds = array<i64: 1, 128>}, {transform_indices = @transform_3, window_bounds = array<i64: 128, 128>}]} {
    %c0 = arith.constant 0 : index
    %c0_0 = arith.constant 0 : index
    %0 = vector.load %arg1[%c0, %c0_0] : memref<128x150xbf16, #tpu.memory_space<vmem>>, vector<128x150xbf16>
    %c0_1 = arith.constant 0 : index
    %c0_2 = arith.constant 0 : index
    %1 = vector.load %arg2[%c0_1, %c0_2] : memref<150x128xbf16, #tpu.memory_space<vmem>>, vector<150x128xbf16>
    %cst = arith.constant dense<0.000000e+00> : vector<128x128xf32>
    %2 = tpu.matmul %0, %1, %cst {dimension_numbers = #tpu.dot_dimension_numbers<[1], [0], [0], [1], [0, 0, 1, 1], [], []>} : vector<128x150xbf16>, vector<150x128xbf16>, vector<128x128xf32> -> vector<128x128xf32>
    %c0_3 = arith.constant 0 : index
    %c0_4 = arith.constant 0 : index
    %3 = vector.load %arg3[%c0_3, %c0_4] : memref<1x128xf32, #tpu.memory_space<vmem>>, vector<1x128xf32>
    %4 = vector.broadcast %3 : vector<1x128xf32> to vector<128x128xf32>
    %5 = arith.addf %2, %4 : vector<128x128xf32>
    %cst_5 = arith.constant 0.000000e+00 : f32
    %6 = vector.broadcast %cst_5 : f32 to vector<128x128xf32>
    %7 = arith.maximumf %5, %6 : vector<128x128xf32>
    %c0_6 = arith.constant 0 : index
    %c0_7 = arith.constant 0 : index
    %8 = vector.load %arg4[%c0_6, %c0_7] : memref<128x128xf32, #tpu.memory_space<vmem>>, vector<128x128xf32>
    tpu.vector_store %arg4[%c0_6, %c0_7], %7 {strides = array<i32>} : memref<128x128xf32, #tpu.memory_space<vmem>>, vector<128x128xf32>,
    return
  }
  func.func @transform_0(%arg0: i32) -> (i32, i32) {
    %c0_i32 = arith.constant 0 : i32
    %c0_i32_0 = arith.constant 0 : i32
    return %arg0, %c0_i32 : i32, i32
  }
  func.func @transform_1(%arg0: i32) -> (i32, i32) {
    %c0_i32 = arith.constant 0 : i32
    %c0_i32_0 = arith.constant 0 : i32
    %c0_i32_1 = arith.constant 0 : i32
    return %c0_i32, %c0_i32_0 : i32, i32
  }
  func.func @transform_2(%arg0: i32) -> (i32, i32) {
    %c0_i32 = arith.constant 0 : i32
    %c0_i32_0 = arith.constant 0 : i32
    %c0_i32_1 = arith.constant 0 : i32
    return %c0_i32, %c0_i32_0 : i32, i32
  }
  func.func @transform_3(%arg0: i32) -> (i32, i32) {
    %c0_i32 = arith.constant 0 : i32
    %c0_i32_0 = arith.constant 0 : i32
    return %arg0, %c0_i32 : i32, i32
  }
}

module attributes {stable_mosaic.version = 11 : i64} {
  func.func @_fused_head_kernel(%arg0: memref<2x256xbf16, #tpu.memory_space<vmem>>, %arg1: memref<256x128xbf16, #tpu.memory_space<vmem>>, %arg2: memref<1x128xf32, #tpu.memory_space<vmem>>, %arg3: memref<128x128xbf16, #tpu.memory_space<vmem>>, %arg4: memref<1x128xf32, #tpu.memory_space<vmem>>, %arg5: memref<128x128xbf16, #tpu.memory_space<vmem>>, %arg6: memref<1x128xf32, #tpu.memory_space<vmem>>, %arg7: memref<2x1xi32, #tpu.memory_space<vmem>>, %arg8: memref<1x1xf32, #tpu.memory_space<vmem>>, %arg9: memref<2x1xi32, #tpu.memory_space<vmem>>) attributes {dimension_semantics = [], scalar_prefetch = 0 : i64, scratch_operands = 0 : i64, tpu.core_type = #tpu.core_type<tc>} {
    %c0 = arith.constant 0 : index
    %c0_0 = arith.constant 0 : index
    %0 = vector.load %arg0[%c0, %c0_0] : memref<2x256xbf16, #tpu.memory_space<vmem>>, vector<2x256xbf16>
    %c0_1 = arith.constant 0 : index
    %c0_2 = arith.constant 0 : index
    %1 = vector.load %arg1[%c0_1, %c0_2] : memref<256x128xbf16, #tpu.memory_space<vmem>>, vector<256x128xbf16>
    %cst = arith.constant dense<0.000000e+00> : vector<2x128xf32>
    %2 = tpu.matmul %0, %1, %cst {dimension_numbers = #tpu.dot_dimension_numbers<[1], [0], [0], [1], [0, 0, 1, 1], [], []>} : vector<2x256xbf16>, vector<256x128xbf16>, vector<2x128xf32> -> vector<2x128xf32>
    %c0_3 = arith.constant 0 : index
    %c0_4 = arith.constant 0 : index
    %3 = vector.load %arg2[%c0_3, %c0_4] : memref<1x128xf32, #tpu.memory_space<vmem>>, vector<1x128xf32>
    %4 = vector.broadcast %3 : vector<1x128xf32> to vector<2x128xf32>
    %5 = arith.addf %2, %4 : vector<2x128xf32>
    %cst_5 = arith.constant 0.000000e+00 : f32
    %6 = vector.broadcast %cst_5 : f32 to vector<2x128xf32>
    %7 = arith.maximumf %5, %6 : vector<2x128xf32>
    %8 = arith.truncf %7 : vector<2x128xf32> to vector<2x128xbf16>
    %c0_6 = arith.constant 0 : index
    %c0_7 = arith.constant 0 : index
    %9 = vector.load %arg3[%c0_6, %c0_7] : memref<128x128xbf16, #tpu.memory_space<vmem>>, vector<128x128xbf16>
    %cst_8 = arith.constant dense<0.000000e+00> : vector<2x128xf32>
    %10 = tpu.matmul %8, %9, %cst_8 {dimension_numbers = #tpu.dot_dimension_numbers<[1], [0], [0], [1], [0, 0, 1, 1], [], []>} : vector<2x128xbf16>, vector<128x128xbf16>, vector<2x128xf32> -> vector<2x128xf32>
    %c0_9 = arith.constant 0 : index
    %c0_10 = arith.constant 0 : index
    %11 = vector.load %arg4[%c0_9, %c0_10] : memref<1x128xf32, #tpu.memory_space<vmem>>, vector<1x128xf32>
    %12 = vector.broadcast %11 : vector<1x128xf32> to vector<2x128xf32>
    %13 = arith.addf %10, %12 : vector<2x128xf32>
    %cst_11 = arith.constant 0.000000e+00 : f32
    %14 = vector.broadcast %cst_11 : f32 to vector<2x128xf32>
    %15 = arith.maximumf %13, %14 : vector<2x128xf32>
    %16 = arith.truncf %15 : vector<2x128xf32> to vector<2x128xbf16>
    %c0_12 = arith.constant 0 : index
    %c0_13 = arith.constant 0 : index
    %17 = vector.load %arg5[%c0_12, %c0_13] : memref<128x128xbf16, #tpu.memory_space<vmem>>, vector<128x128xbf16>
    %cst_14 = arith.constant dense<0.000000e+00> : vector<2x128xf32>
    %18 = tpu.matmul %16, %17, %cst_14 {dimension_numbers = #tpu.dot_dimension_numbers<[1], [0], [0], [1], [0, 0, 1, 1], [], []>} : vector<2x128xbf16>, vector<128x128xbf16>, vector<2x128xf32> -> vector<2x128xf32>
    %c0_15 = arith.constant 0 : index
    %c0_16 = arith.constant 0 : index
    %19 = vector.load %arg6[%c0_15, %c0_16] : memref<1x128xf32, #tpu.memory_space<vmem>>, vector<1x128xf32>
    %20 = vector.broadcast %19 : vector<1x128xf32> to vector<2x128xf32>
    %21 = arith.addf %18, %20 : vector<2x128xf32>
    %22 = tpu.iota {dimensions = array<i32: 1>} : vector<2x128xi32>
    %c10_i32 = arith.constant 10 : i32
    %23 = vector.broadcast %c10_i32 : i32 to vector<2x128xi32>
    %24 = arith.cmpi slt, %22, %23 : vector<2x128xi32>
    %cst_17 = arith.constant -1.000000e+30 : f32
    %25 = vector.broadcast %cst_17 : f32 to vector<2x128xf32>
    %26 = arith.select %24, %21, %25 : vector<2x128xi1>, vector<2x128xf32>
    %cst_18 = arith.constant dense<0xFF800000> : vector<2xf32>
    %27 = vector.multi_reduction <maximumf>, %26, %cst_18 [1] : vector<2x128xf32> to vector<2xf32>
    %28 = vector.shape_cast %27 : vector<2xf32> to vector<2x1xf32>
    %29 = vector.broadcast %28 : vector<2x1xf32> to vector<2x128xf32>
    %30 = arith.subf %26, %29 : vector<2x128xf32>
    %31 = math.exp %30 : vector<2x128xf32>
    %cst_19 = arith.constant dense<0.000000e+00> : vector<2xf32>
    %32 = vector.multi_reduction <add>, %31, %cst_19 [1] : vector<2x128xf32> to vector<2xf32>
    %33 = vector.shape_cast %32 : vector<2xf32> to vector<2x1xf32>
    %34 = math.log %33 : vector<2x1xf32>
    %35 = arith.addf %28, %34 : vector<2x1xf32>
    %c0_20 = arith.constant 0 : index
    %c0_21 = arith.constant 0 : index
    %36 = vector.load %arg7[%c0_20, %c0_21] : memref<2x1xi32, #tpu.memory_space<vmem>>, vector<2x1xi32>
    %37 = vector.broadcast %36 : vector<2x1xi32> to vector<2x128xi32>
    %38 = arith.cmpi eq, %22, %37 : vector<2x128xi32>
    %cst_22 = arith.constant 0.000000e+00 : f32
    %39 = vector.broadcast %cst_22 : f32 to vector<2x128xf32>
    %40 = arith.select %38, %26, %39 : vector<2x128xi1>, vector<2x128xf32>
    %cst_23 = arith.constant dense<0.000000e+00> : vector<2xf32>
    %41 = vector.multi_reduction <add>, %40, %cst_23 [1] : vector<2x128xf32> to vector<2xf32>
    %42 = vector.shape_cast %41 : vector<2xf32> to vector<2x1xf32>
    %43 = arith.subf %35, %42 : vector<2x1xf32>
    %cst_24 = arith.constant dense<0.000000e+00> : vector<1xf32>
    %44 = vector.multi_reduction <add>, %43, %cst_24 [0] : vector<2x1xf32> to vector<1xf32>
    %45 = vector.shape_cast %44 : vector<1xf32> to vector<1x1xf32>
    %cst_25 = arith.constant 5.000000e-01 : f32
    %46 = vector.broadcast %cst_25 : f32 to vector<1x1xf32>
    %47 = arith.mulf %45, %46 : vector<1x1xf32>
    %c0_26 = arith.constant 0 : index
    %c0_27 = arith.constant 0 : index
    %48 = vector.load %arg8[%c0_26, %c0_27] : memref<1x1xf32, #tpu.memory_space<vmem>>, vector<1x1xf32>
    tpu.vector_store %arg8[%c0_26, %c0_27], %47 {strides = array<i32>} : memref<1x1xf32, #tpu.memory_space<vmem>>, vector<1x1xf32>,
    %49 = vector.broadcast %28 : vector<2x1xf32> to vector<2x128xf32>
    %50 = arith.cmpf oeq, %26, %49 : vector<2x128xf32>
    %c128_i32 = arith.constant 128 : i32
    %51 = vector.broadcast %c128_i32 : i32 to vector<2x128xi32>
    %52 = arith.select %50, %22, %51 : vector<2x128xi1>, vector<2x128xi32>
    %cst_28 = arith.constant dense<2147483647> : vector<2xi32>
    %53 = vector.multi_reduction <minsi>, %52, %cst_28 [1] : vector<2x128xi32> to vector<2xi32>
    %54 = vector.shape_cast %53 : vector<2xi32> to vector<2x1xi32>
    %c0_29 = arith.constant 0 : index
    %c0_30 = arith.constant 0 : index
    %55 = vector.load %arg9[%c0_29, %c0_30] : memref<2x1xi32, #tpu.memory_space<vmem>>, vector<2x1xi32>
    tpu.vector_store %arg9[%c0_29, %c0_30], %54 {strides = array<i32>} : memref<2x1xi32, #tpu.memory_space<vmem>>, vector<2x1xi32>,
    return
  }
}

</mosaic_0001>

<bundles_post_ra>
// kernel: my_model_forward.3
= control target key start
LH: loop header
LB: loop body
LE: loop exit
PB: predicated region body
PF: predicated region fallthrough
CT: control target
= control target key end

     0   :  { %s1364_s12 = smov 0   ;;  %s1616_s0 = inlined_call_operand.vmem [shape: bf16[1152,25], index: 0, kind: input, shape index: {}]   ;;  %s1617_s1 = inlined_call_operand.vmem [shape: bf16[25,128], index: 1, kind: input, shape index: {}]   ;;  %s1618_s2 = inlined_call_operand.vmem [shape: f32[1,128], index: 2, kind: input, shape index: {}]   ;;  %s1619_s3 = inlined_call_operand.vmem [shape: f32[1152,128], index: 3, kind: output, shape index: {}]  }
   0x1 LB: > { %s1086_s13 = sadd.s32 4294967295, %s1341_s12   ;;  %p1090_p0 = scmp.ge.s32.totalorder %s1341_s12, 1  ;;  %s1341_s12 = sphi %s1364_s12, %s13_s12  }
   0x2   : > { %p138_p1 = scmp.lt.s32.totalorder %s1341_s12, 3 }
   0x4   : > { %p139_p2 = pnand %p1090_p0, %p138_p1 }
   0x5   : > { %v1297_v0 = vld [vmem:[%s1617_s1] sm:$0xff] (!%p139_p2)   ;;  %vm558_vm0 = vcmask (!%p139_p2), 1043456   ;;  %v1298_v1 = vld [vmem:[%s1617_s1 + $0x8] sm:$0x1f] (!%p139_p2)   ;;  %vm559_vm1 = vcmask (!%p139_p2), 1044480   ;;  %s162_s18 = smul.u32 (!%p139_p2), 72, %s1086_s13 }
   0x6   : > { %142 = sbr.rel (%p139_p2) target bundleno = 302 (0x12e), region = 32  ;;  %1208 = vmatprep.subr.bf16.mxu0 (!%p139_p2), %v1297_v0  ;;  %1284 = vmatprep.subr.bf16.mxu1 (!%p139_p2), %v1297_v0  ;;  %v1343_v2 = vmov (!%p139_p2), 65535   ;;  %vm449_vm2 = vcmask (!%p139_p2), 203776   ;;  %v1461_v42 = vld [vmem:[%s1618_s2] ss:$0 sm:$0xff] (!%p139_p2) }
   0x7   : > { %1209 = vmatpush3.bf16.msra.mxu0 (!%p139_p2), %v1297_v0  ;;  %1286 = vmatpush3.bf16.msra.mxu1 (!%p139_p2), %v1297_v0  ;;  %v560_v3 = vsel (!%p139_p2), %vm558_vm0, 4294967295, %v1343_v2  ;;  %p163_p3 = scmp.lt.s32.totalorder (!%p139_p2), %s162_s18, 143 }
   0x8   : > { %v561_v4 = vsel (!%p139_p2), %vm559_vm1, %v560_v3, 0 }
   0x9   : > { %v563_v5 = vand.u32 (!%p139_p2), %v1298_v1, %v561_v4 }
   0xb   : > { %1210 = vmatprep.subr.bf16.mxu0 (!%p139_p2), %v563_v5  ;;  %1285 = vmatprep.subr.bf16.mxu1 (!%p139_p2), %v563_v5 }
   0xc   : > { %1211 = vmatpush3.bf16.msra.mxu0 (!%p139_p2), %v563_v5  ;;  %1287 = vmatpush3.bf16.msra.mxu1 (!%p139_p2), %v563_v5 }
   0xd   : > { %s1621_s18 = smov (!%p163_p3, %s162_s18), 143 }
   0xe   : > { %s1091_s19 = sshll.u32 %s1621_s18, 2  ;;  %s1092_s25 = sshll.u32 %s1621_s18, 3 }
   0xf   : > { %s1384_s22 = scalar_lea.vmem %s1616_s0, %s1091_s19  ;;  %s1468_s28 = scalar_lea.vmem %s1619_s3, %s1092_s25 }
  0x10   : > { %v1299_v6 = vld [vmem:[%s1384_s22] sm:$0xff]   ;;  %v1300_v7 = vld [vmem:[%s1384_s22 + $0x90] sm:$0xff]   ;;  %v1301_v8 = vld [vmem:[%s1384_s22 + $0x8] sm:$0xff]  }
  0x11   : > { %1212 = vmatprep.mubr.msk.bf16.mxu0 %vm449_vm2, %v1299_v6  ;;  %1248 = vmatprep.mubr.msk.bf16.mxu1 %vm449_vm2, %v1300_v7  ;;  %v1302_v9 = vld [vmem:[%s1384_s22 + $0x98] sm:$0xff]   ;;  %v1303_v10 = vld [vmem:[%s1384_s22 + $0x10] sm:$0xff]   ;;  %v1304_v11 = vld [vmem:[%s1384_s22 + $0xa0] sm:$0xff]  }
  0x12   : > { %1213 = vmatmul.mubr.msk.bf16.vlgmr.msra.gmra.mrb[0].mxu0 %vm449_vm2, %v1301_v8  ;;  %1249 = vmatmul.mubr.msk.bf16.vlgmr.msra.gmra.mrb[0].mxu1 %vm449_vm2, %v1302_v9  ;;  %v1305_v12 = vld [vmem:[%s1384_s22 + $0x18] sm:$0xff]   ;;  %v1306_v13 = vld [vmem:[%s1384_s22 + $0xa8] sm:$0xff]   ;;  %v1307_v14 = vld [vmem:[%s1384_s22 + $0x20] sm:$0xff]  }
  0x13   : > { %1216 = vmatprep.mubr.msk.bf16.mxu0 %vm449_vm2, %v1303_v10  ;;  %1252 = vmatprep.mubr.msk.bf16.mxu1 %vm449_vm2, %v1304_v11  ;;  %v1308_v15 = vld [vmem:[%s1384_s22 + $0xb0] sm:$0xff]   ;;  %v1309_v16 = vld [vmem:[%s1384_s22 + $0x28] sm:$0xff]   ;;  %v1310_v17 = vld [vmem:[%s1384_s22 + $0xb8] sm:$0xff]  }
  0x14   : > { %v1311_v18 = vld [vmem:[%s1384_s22 + $0x30] sm:$0xff]   ;;  %v1312_v19 = vld [vmem:[%s1384_s22 + $0xc0] sm:$0xff]   ;;  %v1313_v20 = vld [vmem:[%s1384_s22 + $0x38] sm:$0xff]  }
  0x15   : > { %v1314_v21 = vld [vmem:[%s1384_s22 + $0xc8] sm:$0xff]   ;;  %v1315_v22 = vld [vmem:[%s1384_s22 + $0x40] sm:$0xff]   ;;  %v1316_v23 = vld [vmem:[%s1384_s22 + $0xd0] sm:$0xff]  }
  0x16   : > { %v1317_v24 = vld [vmem:[%s1384_s22 + $0x48] sm:$0xff]   ;;  %v1318_v25 = vld [vmem:[%s1384_s22 + $0xd8] sm:$0xff]   ;;  %v1319_v26 = vld [vmem:[%s1384_s22 + $0x50] sm:$0xff]  }
  0x17   : > { %v1320_v27 = vld [vmem:[%s1384_s22 + $0xe0] sm:$0xff]   ;;  %v1321_v28 = vld [vmem:[%s1384_s22 + $0x58] sm:$0xff]   ;;  %v1322_v29 = vld [vmem:[%s1384_s22 + $0xe8] sm:$0xff]  }
  0x18   : > { %v1323_v30 = vld [vmem:[%s1384_s22 + $0x60] sm:$0xff]   ;;  %v1324_v31 = vld [vmem:[%s1384_s22 + $0xf0] sm:$0xff]   ;;  %v1325_v32 = vld [vmem:[%s1384_s22 + $0x68] sm:$0xff]  }
  0x19   : > { %v1326_v33 = vld [vmem:[%s1384_s22 + $0xf8] sm:$0xff]   ;;  %v1327_v34 = vld [vmem:[%s1384_s22 + $0x70] sm:$0xff]   ;;  %v1328_v35 = vld [vmem:[%s1384_s22 + $0x100] sm:$0xff]  }
  0x1a   : > { %1217 = vmatmul.mubr.msk.bf16.gmra.mrb[4].mxu0 %vm449_vm2, %v1305_v12  ;;  %1253 = vmatmul.mubr.msk.bf16.gmra.mrb[4].mxu1 %vm449_vm2, %v1306_v13  ;;  %v1329_v36 = vld [vmem:[%s1384_s22 + $0x78] sm:$0xff]   ;;  %v1330_v37 = vld [vmem:[%s1384_s22 + $0x108] sm:$0xff]   ;;  %v1331_v38 = vld [vmem:[%s1384_s22 + $0x80] sm:$0xff]  }
  0x1b   : > { %1220 = vmatprep.mubr.msk.bf16.mxu0 %vm449_vm2, %v1307_v14  ;;  %1256 = vmatprep.mubr.msk.bf16.mxu1 %vm449_vm2, %v1308_v15  ;;  %v1332_v39 = vld [vmem:[%s1384_s22 + $0x110] sm:$0xff]   ;;  %v1333_v40 = vld [vmem:[%s1384_s22 + $0x88] sm:$0xff]   ;;  %v1334_v41 = vld [vmem:[%s1384_s22 + $0x118] sm:$0xff]  }
  0x22   : > { %1221 = vmatmul.mubr.msk.bf16.gmra.mrb[8].mxu0 %vm449_vm2, %v1309_v16  ;;  %1257 = vmatmul.mubr.msk.bf16.gmra.mrb[8].mxu1 %vm449_vm2, %v1310_v17 }
  0x23   : > { %1224 = vmatprep.mubr.msk.bf16.mxu0 %vm449_vm2, %v1311_v18  ;;  %1260 = vmatprep.mubr.msk.bf16.mxu1 %vm449_vm2, %v1312_v19 }
  0x2a   : > { %1225 = vmatmul.mubr.msk.bf16.gmra.mrb[12].mxu0 %vm449_vm2, %v1313_v20  ;;  %1261 = vmatmul.mubr.msk.bf16.gmra.mrb[12].mxu1 %vm449_vm2, %v1314_v21 }
  0x2b   : > { %1228 = vmatprep.mubr.msk.bf16.mxu0 %vm449_vm2, %v1315_v22  ;;  %1264 = vmatprep.mubr.msk.bf16.mxu1 %vm449_vm2, %v1316_v23 }
  0x32   : > { %1229 = vmatmul.mubr.msk.bf16.gmra.mrb[16].mxu0 %vm449_vm2, %v1317_v24  ;;  %1265 = vmatmul.mubr.msk.bf16.gmra.mrb[16].mxu1 %vm449_vm2, %v1318_v25 }
  0x33   : > { %1232 = vmatprep.mubr.msk.bf16.mxu0 %vm449_vm2, %v1319_v26  ;;  %1268 = vmatprep.mubr.msk.bf16.mxu1 %vm449_vm2, %v1320_v27 }
  0x3a   : > { %1233 = vmatmul.mubr.msk.bf16.gmra.mrb[20].mxu0 %vm449_vm2, %v1321_v28  ;;  %1269 = vmatmul.mubr.msk.bf16.gmra.mrb[20].mxu1 %vm449_vm2, %v1322_v29 }
  0x3b   : > { %1236 = vmatprep.mubr.msk.bf16.mxu0 %vm449_vm2, %v1323_v30  ;;  %1272 = vmatprep.mubr.msk.bf16.mxu1 %vm449_vm2, %v1324_v31 }
  0x42   : > { %1237 = vmatmul.mubr.msk.bf16.gmra.mrb[24].mxu0 %vm449_vm2, %v1325_v32  ;;  %1273 = vmatmul.mubr.msk.bf16.gmra.mrb[24].mxu1 %vm449_vm2, %v1326_v33 }
  0x43   : > { %1240 = vmatprep.mubr.msk.bf16.mxu0 %vm449_vm2, %v1327_v34  ;;  %1276 = vmatprep.mubr.msk.bf16.mxu1 %vm449_vm2, %v1328_v35 }
  0x4a   : > { %1241 = vmatmul.mubr.msk.bf16.gmra.mrb[28].mxu0 %vm449_vm2, %v1329_v36  ;;  %1277 = vmatmul.mubr.msk.bf16.gmra.mrb[28].mxu1 %vm449_vm2, %v1330_v37 }
  0x4b   : > { %1244 = vmatprep.mubr.msk.bf16.mxu0 %vm449_vm2, %v1331_v38  ;;  %1280 = vmatprep.mubr.msk.bf16.mxu1 %vm449_vm2, %v1332_v39 }
  0x52   : > { %1245 = vmatmul.mubr.msk.bf16.gmra.mrb[32].mxu0 %vm449_vm2, %v1333_v40  ;;  %1281 = vmatmul.mubr.msk.bf16.gmra.mrb[32].mxu1 %vm449_vm2, %v1334_v41 }
  0xe5   : > { %v1214_v43 = vpop.f32.mrb[0].mxu0  ;;  %v1250_v45 = vpop.f32.mrb[0].mxu1 }
  0xe6   : > { %v608_v44 = vadd.f32 %v1214_v43, %v1461_v42  ;;  %v599_v46 = vpop.f32.mrb[1].mxu0  ;;  %v752_v47 = vadd.f32 %v1250_v45, %v1461_v42  ;;  %v743_v49 = vpop.f32.mrb[1].mxu1 }
  0xe7   : > { %v600_v48 = vadd.f32 %v1461_v42, %v599_v46  ;;  %v1215_v50 = vpop.f32.mrb[2].mxu0  ;;  %v744_v52 = vadd.f32 %v1461_v42, %v743_v49  ;;  %v1251_v54 = vpop.f32.mrb[2].mxu1 }
  0xe8   : > { %v888_v51 = vmax.f32 %v608_v44, 0.0  ;;  %v611_v53 = vadd.f32 %v1215_v50, %v1461_v42  ;;  %v602_v55 = vpop.f32.mrb[3].mxu0  ;;  %v924_v56 = vmax.f32 %v752_v47, 0.0  ;;  %v755_v58 = vadd.f32 %v1251_v54, %v1461_v42  ;;  %v746_v60 = vpop.f32.mrb[3].mxu1 }
  0xe9   : > { %v886_v57 = vmax.f32 %v600_v48, 0.0  ;;  %v603_v59 = vadd.f32 %v1461_v42, %v602_v55  ;;  %v922_v61 = vmax.f32 %v744_v52, 0.0  ;;  %v747_v63 = vadd.f32 %v1461_v42, %v746_v60 }
  0xea   : > { %960 = vst [vmem:[%s1468_s28 + $0x10] sm:$0xff] %v888_v51  ;;  %v889_v62 = vmax.f32 %v611_v53, 0.0  ;;  %996 = vst [vmem:[%s1468_s28 + $0x130] sm:$0xff] %v924_v56  ;;  %v925_v0 = vmax.f32 %v755_v58, 0.0 }
  0xeb   : > { %958 = vst [vmem:[%s1468_s28] sm:$0xff] %v886_v57  ;;  %v887_v1 = vmax.f32 %v603_v59, 0.0  ;;  %994 = vst [vmem:[%s1468_s28 + $0x120] sm:$0xff] %v922_v61  ;;  %v923_v2 = vmax.f32 %v747_v63, 0.0 }
  0xec   : > { %961 = vst [vmem:[%s1468_s28 + $0x18] sm:$0xff] %v889_v62  ;;  %997 = vst [vmem:[%s1468_s28 + $0x138] sm:$0xff] %v925_v0 }
  0xed   : > { %959 = vst [vmem:[%s1468_s28 + $0x8] sm:$0xff] %v887_v1  ;;  %v1218_v3 = vpop.f32.mrb[4].mxu0  ;;  %995 = vst [vmem:[%s1468_s28 + $0x128] sm:$0xff] %v923_v2  ;;  %v1254_v5 = vpop.f32.mrb[4].mxu1 }
  0xee   : > { %v624_v4 = vadd.f32 %v1218_v3, %v1461_v42  ;;  %v615_v6 = vpop.f32.mrb[5].mxu0  ;;  %v768_v7 = vadd.f32 %v1254_v5, %v1461_v42  ;;  %v759_v9 = vpop.f32.mrb[5].mxu1 }
  0xef   : > { %v616_v8 = vadd.f32 %v1461_v42, %v615_v6  ;;  %v1219_v10 = vpop.f32.mrb[6].mxu0  ;;  %v760_v12 = vadd.f32 %v1461_v42, %v759_v9  ;;  %v1255_v14 = vpop.f32.mrb[6].mxu1 }
  0xf0   : > { %v892_v11 = vmax.f32 %v624_v4, 0.0  ;;  %v627_v13 = vadd.f32 %v1219_v10, %v1461_v42  ;;  %v618_v15 = vpop.f32.mrb[7].mxu0  ;;  %v928_v16 = vmax.f32 %v768_v7, 0.0  ;;  %v771_v18 = vadd.f32 %v1255_v14, %v1461_v42  ;;  %v762_v20 = vpop.f32.mrb[7].mxu1 }
  0xf1   : > { %v890_v17 = vmax.f32 %v616_v8, 0.0  ;;  %v619_v19 = vadd.f32 %v1461_v42, %v618_v15  ;;  %v926_v21 = vmax.f32 %v760_v12, 0.0  ;;  %v763_v23 = vadd.f32 %v1461_v42, %v762_v20 }
  0xf2   : > { %964 = vst [vmem:[%s1468_s28 + $0x30] sm:$0xff] %v892_v11  ;;  %v893_v22 = vmax.f32 %v627_v13, 0.0  ;;  %1000 = vst [vmem:[%s1468_s28 + $0x150] sm:$0xff] %v928_v16  ;;  %v929_v24 = vmax.f32 %v771_v18, 0.0 }
  0xf3   : > { %962 = vst [vmem:[%s1468_s28 + $0x20] sm:$0xff] %v890_v17  ;;  %v891_v25 = vmax.f32 %v619_v19, 0.0  ;;  %998 = vst [vmem:[%s1468_s28 + $0x140] sm:$0xff] %v926_v21  ;;  %v927_v26 = vmax.f32 %v763_v23, 0.0 }
  0xf4   : > { %965 = vst [vmem:[%s1468_s28 + $0x38] sm:$0xff] %v893_v22  ;;  %1001 = vst [vmem:[%s1468_s28 + $0x158] sm:$0xff] %v929_v24 }
  0xf5   : > { %963 = vst [vmem:[%s1468_s28 + $0x28] sm:$0xff] %v891_v25  ;;  %v1222_v27 = vpop.f32.mrb[8].mxu0  ;;  %999 = vst [vmem:[%s1468_s28 + $0x148] sm:$0xff] %v927_v26  ;;  %v1258_v29 = vpop.f32.mrb[8].mxu1 }
  0xf6   : > { %v640_v28 = vadd.f32 %v1222_v27, %v1461_v42  ;;  %v631_v30 = vpop.f32.mrb[9].mxu0  ;;  %v784_v31 = vadd.f32 %v1258_v29, %v1461_v42  ;;  %v775_v33 = vpop.f32.mrb[9].mxu1 }
  0xf7   : > { %v632_v32 = vadd.f32 %v1461_v42, %v631_v30  ;;  %v1223_v34 = vpop.f32.mrb[10].mxu0  ;;  %v776_v36 = vadd.f32 %v1461_v42, %v775_v33  ;;  %v1259_v38 = vpop.f32.mrb[10].mxu1 }
  0xf8   : > { %v896_v35 = vmax.f32 %v640_v28, 0.0  ;;  %v643_v37 = vadd.f32 %v1223_v34, %v1461_v42  ;;  %v634_v39 = vpop.f32.mrb[11].mxu0  ;;  %v932_v40 = vmax.f32 %v784_v31, 0.0  ;;  %v787_v43 = vadd.f32 %v1259_v38, %v1461_v42  ;;  %v778_v45 = vpop.f32.mrb[11].mxu1 }
  0xf9   : > { %v894_v41 = vmax.f32 %v632_v32, 0.0  ;;  %v635_v44 = vadd.f32 %v1461_v42, %v634_v39  ;;  %v930_v46 = vmax.f32 %v776_v36, 0.0  ;;  %v779_v48 = vadd.f32 %v1461_v42, %v778_v45 }
  0xfa   : > { %968 = vst [vmem:[%s1468_s28 + $0x50] sm:$0xff] %v896_v35  ;;  %v897_v47 = vmax.f32 %v643_v37, 0.0  ;;  %1004 = vst [vmem:[%s1468_s28 + $0x170] sm:$0xff] %v932_v40  ;;  %v933_v49 = vmax.f32 %v787_v43, 0.0 }
  0xfb   : > { %966 = vst [vmem:[%s1468_s28 + $0x40] sm:$0xff] %v894_v41  ;;  %v895_v50 = vmax.f32 %v635_v44, 0.0  ;;  %1002 = vst [vmem:[%s1468_s28 + $0x160] sm:$0xff] %v930_v46  ;;  %v931_v51 = vmax.f32 %v779_v48, 0.0 }
  0xfc   : > { %969 = vst [vmem:[%s1468_s28 + $0x58] sm:$0xff] %v897_v47  ;;  %1005 = vst [vmem:[%s1468_s28 + $0x178] sm:$0xff] %v933_v49 }
  0xfd   : > { %967 = vst [vmem:[%s1468_s28 + $0x48] sm:$0xff] %v895_v50  ;;  %v1226_v52 = vpop.f32.mrb[12].mxu0  ;;  %1003 = vst [vmem:[%s1468_s28 + $0x168] sm:$0xff] %v931_v51  ;;  %v1262_v54 = vpop.f32.mrb[12].mxu1 }
  0xfe   : > { %v656_v53 = vadd.f32 %v1226_v52, %v1461_v42  ;;  %v647_v55 = vpop.f32.mrb[13].mxu0  ;;  %v800_v56 = vadd.f32 %v1262_v54, %v1461_v42  ;;  %v791_v58 = vpop.f32.mrb[13].mxu1 }
  0xff   : > { %v648_v57 = vadd.f32 %v1461_v42, %v647_v55  ;;  %v1227_v59 = vpop.f32.mrb[14].mxu0  ;;  %v792_v61 = vadd.f32 %v1461_v42, %v791_v58  ;;  %v1263_v63 = vpop.f32.mrb[14].mxu1 }
 0x100   : > { %v900_v60 = vmax.f32 %v656_v53, 0.0  ;;  %v659_v62 = vadd.f32 %v1227_v59, %v1461_v42  ;;  %v650_v0 = vpop.f32.mrb[15].mxu0  ;;  %v936_v1 = vmax.f32 %v800_v56, 0.0  ;;  %v803_v3 = vadd.f32 %v1263_v63, %v1461_v42  ;;  %v794_v5 = vpop.f32.mrb[15].mxu1 }
 0x101   : > { %v898_v2 = vmax.f32 %v648_v57, 0.0  ;;  %v651_v4 = vadd.f32 %v1461_v42, %v650_v0  ;;  %v934_v6 = vmax.f32 %v792_v61, 0.0  ;;  %v795_v8 = vadd.f32 %v1461_v42, %v794_v5 }
 0x102   : > { %972 = vst [vmem:[%s1468_s28 + $0x70] sm:$0xff] %v900_v60  ;;  %v901_v7 = vmax.f32 %v659_v62, 0.0  ;;  %1008 = vst [vmem:[%s1468_s28 + $0x190] sm:$0xff] %v936_v1  ;;  %v937_v9 = vmax.f32 %v803_v3, 0.0 }
 0x103   : > { %970 = vst [vmem:[%s1468_s28 + $0x60] sm:$0xff] %v898_v2  ;;  %v899_v10 = vmax.f32 %v651_v4, 0.0  ;;  %1006 = vst [vmem:[%s1468_s28 + $0x180] sm:$0xff] %v934_v6  ;;  %v935_v11 = vmax.f32 %v795_v8, 0.0 }
 0x104   : > { %973 = vst [vmem:[%s1468_s28 + $0x78] sm:$0xff] %v901_v7  ;;  %1009 = vst [vmem:[%s1468_s28 + $0x198] sm:$0xff] %v937_v9 }
 0x105   : > { %971 = vst [vmem:[%s1468_s28 + $0x68] sm:$0xff] %v899_v10  ;;  %v1230_v12 = vpop.f32.mrb[16].mxu0  ;;  %1007 = vst [vmem:[%s1468_s28 + $0x188] sm:$0xff] %v935_v11  ;;  %v1266_v14 = vpop.f32.mrb[16].mxu1 }
 0x106   : > { %v672_v13 = vadd.f32 %v1230_v12, %v1461_v42  ;;  %v663_v15 = vpop.f32.mrb[17].mxu0  ;;  %v816_v16 = vadd.f32 %v1266_v14, %v1461_v42  ;;  %v807_v18 = vpop.f32.mrb[17].mxu1 }
 0x107   : > { %v664_v17 = vadd.f32 %v1461_v42, %v663_v15  ;;  %v1231_v19 = vpop.f32.mrb[18].mxu0  ;;  %v808_v21 = vadd.f32 %v1461_v42, %v807_v18  ;;  %v1267_v23 = vpop.f32.mrb[18].mxu1 }
 0x108   : > { %v904_v20 = vmax.f32 %v672_v13, 0.0  ;;  %v675_v22 = vadd.f32 %v1231_v19, %v1461_v42  ;;  %v666_v24 = vpop.f32.mrb[19].mxu0  ;;  %v940_v25 = vmax.f32 %v816_v16, 0.0  ;;  %v819_v27 = vadd.f32 %v1267_v23, %v1461_v42  ;;  %v810_v29 = vpop.f32.mrb[19].mxu1 }
 0x109   : > { %v902_v26 = vmax.f32 %v664_v17, 0.0  ;;  %v667_v28 = vadd.f32 %v1461_v42, %v666_v24  ;;  %v938_v30 = vmax.f32 %v808_v21, 0.0  ;;  %v811_v32 = vadd.f32 %v1461_v42, %v810_v29 }
 0x10a   : > { %976 = vst [vmem:[%s1468_s28 + $0x90] sm:$0xff] %v904_v20  ;;  %v905_v31 = vmax.f32 %v675_v22, 0.0  ;;  %1012 = vst [vmem:[%s1468_s28 + $0x1b0] sm:$0xff] %v940_v25  ;;  %v941_v33 = vmax.f32 %v819_v27, 0.0 }
 0x10b   : > { %974 = vst [vmem:[%s1468_s28 + $0x80] sm:$0xff] %v902_v26  ;;  %v903_v34 = vmax.f32 %v667_v28, 0.0  ;;  %1010 = vst [vmem:[%s1468_s28 + $0x1a0] sm:$0xff] %v938_v30  ;;  %v939_v35 = vmax.f32 %v811_v32, 0.0 }
 0x10c   : > { %977 = vst [vmem:[%s1468_s28 + $0x98] sm:$0xff] %v905_v31  ;;  %1013 = vst [vmem:[%s1468_s28 + $0x1b8] sm:$0xff] %v941_v33 }
 0x10d   : > { %975 = vst [vmem:[%s1468_s28 + $0x88] sm:$0xff] %v903_v34  ;;  %v1234_v36 = vpop.f32.mrb[20].mxu0  ;;  %1011 = vst [vmem:[%s1468_s28 + $0x1a8] sm:$0xff] %v939_v35  ;;  %v1270_v38 = vpop.f32.mrb[20].mxu1 }
 0x10e   : > { %v688_v37 = vadd.f32 %v1234_v36, %v1461_v42  ;;  %v679_v39 = vpop.f32.mrb[21].mxu0  ;;  %v832_v40 = vadd.f32 %v1270_v38, %v1461_v42  ;;  %v823_v43 = vpop.f32.mrb[21].mxu1 }
 0x10f   : > { %v680_v41 = vadd.f32 %v1461_v42, %v679_v39  ;;  %v1235_v44 = vpop.f32.mrb[22].mxu0  ;;  %v824_v46 = vadd.f32 %v1461_v42, %v823_v43  ;;  %v1271_v48 = vpop.f32.mrb[22].mxu1 }
 0x110   : > { %v908_v45 = vmax.f32 %v688_v37, 0.0  ;;  %v691_v47 = vadd.f32 %v1235_v44, %v1461_v42  ;;  %v682_v49 = vpop.f32.mrb[23].mxu0  ;;  %v944_v50 = vmax.f32 %v832_v40, 0.0  ;;  %v835_v52 = vadd.f32 %v1271_v48, %v1461_v42  ;;  %v826_v54 = vpop.f32.mrb[23].mxu1 }
 0x111   : > { %v906_v51 = vmax.f32 %v680_v41, 0.0  ;;  %v683_v53 = vadd.f32 %v1461_v42, %v682_v49  ;;  %v942_v55 = vmax.f32 %v824_v46, 0.0  ;;  %v827_v57 = vadd.f32 %v1461_v42, %v826_v54 }
 0x112   : > { %980 = vst [vmem:[%s1468_s28 + $0xb0] sm:$0xff] %v908_v45  ;;  %v909_v56 = vmax.f32 %v691_v47, 0.0  ;;  %1016 = vst [vmem:[%s1468_s28 + $0x1d0] sm:$0xff] %v944_v50  ;;  %v945_v58 = vmax.f32 %v835_v52, 0.0 }
 0x113   : > { %978 = vst [vmem:[%s1468_s28 + $0xa0] sm:$0xff] %v906_v51  ;;  %v907_v59 = vmax.f32 %v683_v53, 0.0  ;;  %1014 = vst [vmem:[%s1468_s28 + $0x1c0] sm:$0xff] %v942_v55  ;;  %v943_v60 = vmax.f32 %v827_v57, 0.0 }
 0x114   : > { %981 = vst [vmem:[%s1468_s28 + $0xb8] sm:$0xff] %v909_v56  ;;  %1017 = vst [vmem:[%s1468_s28 + $0x1d8] sm:$0xff] %v945_v58 }
 0x115   : > { %979 = vst [vmem:[%s1468_s28 + $0xa8] sm:$0xff] %v907_v59  ;;  %v1238_v61 = vpop.f32.mrb[24].mxu0  ;;  %1015 = vst [vmem:[%s1468_s28 + $0x1c8] sm:$0xff] %v943_v60  ;;  %v1274_v63 = vpop.f32.mrb[24].mxu1 }
 0x116   : > { %v704_v62 = vadd.f32 %v1238_v61, %v1461_v42  ;;  %v695_v0 = vpop.f32.mrb[25].mxu0  ;;  %v848_v1 = vadd.f32 %v1274_v63, %v1461_v42  ;;  %v839_v3 = vpop.f32.mrb[25].mxu1 }
 0x117   : > { %v696_v2 = vadd.f32 %v1461_v42, %v695_v0  ;;  %v1239_v4 = vpop.f32.mrb[26].mxu0  ;;  %v840_v6 = vadd.f32 %v1461_v42, %v839_v3  ;;  %v1275_v8 = vpop.f32.mrb[26].mxu1 }
 0x118   : > { %v912_v5 = vmax.f32 %v704_v62, 0.0  ;;  %v707_v7 = vadd.f32 %v1239_v4, %v1461_v42  ;;  %v698_v9 = vpop.f32.mrb[27].mxu0  ;;  %v948_v10 = vmax.f32 %v848_v1, 0.0  ;;  %v851_v12 = vadd.f32 %v1275_v8, %v1461_v42  ;;  %v842_v14 = vpop.f32.mrb[27].mxu1 }
 0x119   : > { %v910_v11 = vmax.f32 %v696_v2, 0.0  ;;  %v699_v13 = vadd.f32 %v1461_v42, %v698_v9  ;;  %v946_v15 = vmax.f32 %v840_v6, 0.0  ;;  %v843_v17 = vadd.f32 %v1461_v42, %v842_v14 }
 0x11a   : > { %984 = vst [vmem:[%s1468_s28 + $0xd0] sm:$0xff] %v912_v5  ;;  %v913_v16 = vmax.f32 %v707_v7, 0.0  ;;  %1020 = vst [vmem:[%s1468_s28 + $0x1f0] sm:$0xff] %v948_v10  ;;  %v949_v18 = vmax.f32 %v851_v12, 0.0 }
 0x11b   : > { %982 = vst [vmem:[%s1468_s28 + $0xc0] sm:$0xff] %v910_v11  ;;  %v911_v19 = vmax.f32 %v699_v13, 0.0  ;;  %1018 = vst [vmem:[%s1468_s28 + $0x1e0] sm:$0xff] %v946_v15  ;;  %v947_v20 = vmax.f32 %v843_v17, 0.0 }
 0x11c   : > { %985 = vst [vmem:[%s1468_s28 + $0xd8] sm:$0xff] %v913_v16  ;;  %1021 = vst [vmem:[%s1468_s28 + $0x1f8] sm:$0xff] %v949_v18 }
 0x11d   : > { %983 = vst [vmem:[%s1468_s28 + $0xc8] sm:$0xff] %v911_v19  ;;  %v1242_v21 = vpop.f32.mrb[28].mxu0  ;;  %1019 = vst [vmem:[%s1468_s28 + $0x1e8] sm:$0xff] %v947_v20  ;;  %v1278_v23 = vpop.f32.mrb[28].mxu1 }
 0x11e   : > { %v720_v22 = vadd.f32 %v1242_v21, %v1461_v42  ;;  %v711_v24 = vpop.f32.mrb[29].mxu0  ;;  %v864_v25 = vadd.f32 %v1278_v23, %v1461_v42  ;;  %v855_v27 = vpop.f32.mrb[29].mxu1 }
 0x11f   : > { %v712_v26 = vadd.f32 %v1461_v42, %v711_v24  ;;  %v1243_v28 = vpop.f32.mrb[30].mxu0  ;;  %v856_v30 = vadd.f32 %v1461_v42, %v855_v27  ;;  %v1279_v32 = vpop.f32.mrb[30].mxu1 }
 0x120   : > { %v916_v29 = vmax.f32 %v720_v22, 0.0  ;;  %v723_v31 = vadd.f32 %v1243_v28, %v1461_v42  ;;  %v714_v33 = vpop.f32.mrb[31].mxu0  ;;  %v952_v34 = vmax.f32 %v864_v25, 0.0  ;;  %v867_v36 = vadd.f32 %v1279_v32, %v1461_v42  ;;  %v858_v38 = vpop.f32.mrb[31].mxu1 }
 0x121   : > { %v914_v35 = vmax.f32 %v712_v26, 0.0  ;;  %v715_v37 = vadd.f32 %v1461_v42, %v714_v33  ;;  %v950_v39 = vmax.f32 %v856_v30, 0.0  ;;  %v859_v41 = vadd.f32 %v1461_v42, %v858_v38 }
 0x122   : > { %988 = vst [vmem:[%s1468_s28 + $0xf0] sm:$0xff] %v916_v29  ;;  %v917_v40 = vmax.f32 %v723_v31, 0.0  ;;  %1024 = vst [vmem:[%s1468_s28 + $0x210] sm:$0xff] %v952_v34  ;;  %v953_v43 = vmax.f32 %v867_v36, 0.0 }
 0x123   : > { %986 = vst [vmem:[%s1468_s28 + $0xe0] sm:$0xff] %v914_v35  ;;  %v915_v44 = vmax.f32 %v715_v37, 0.0  ;;  %1022 = vst [vmem:[%s1468_s28 + $0x200] sm:$0xff] %v950_v39  ;;  %v951_v45 = vmax.f32 %v859_v41, 0.0 }
 0x124   : > { %989 = vst [vmem:[%s1468_s28 + $0xf8] sm:$0xff] %v917_v40  ;;  %1025 = vst [vmem:[%s1468_s28 + $0x218] sm:$0xff] %v953_v43 }
 0x125   : > { %987 = vst [vmem:[%s1468_s28 + $0xe8] sm:$0xff] %v915_v44  ;;  %v1246_v46 = vpop.f32.mrb[32].mxu0  ;;  %1023 = vst [vmem:[%s1468_s28 + $0x208] sm:$0xff] %v951_v45  ;;  %v1282_v48 = vpop.f32.mrb[32].mxu1 }
 0x126   : > { %v736_v47 = vadd.f32 %v1246_v46, %v1461_v42  ;;  %v727_v49 = vpop.f32.mrb[33].mxu0  ;;  %v880_v50 = vadd.f32 %v1282_v48, %v1461_v42  ;;  %v871_v52 = vpop.f32.mrb[33].mxu1 }
 0x127   : > { %v728_v51 = vadd.f32 %v1461_v42, %v727_v49  ;;  %v1247_v53 = vpop.f32.mrb[34].mxu0  ;;  %v872_v55 = vadd.f32 %v1461_v42, %v871_v52  ;;  %v1283_v57 = vpop.f32.mrb[34].mxu1 }
 0x128   : > { %v920_v54 = vmax.f32 %v736_v47, 0.0  ;;  %v739_v56 = vadd.f32 %v1247_v53, %v1461_v42  ;;  %v730_v58 = vpop.f32.mrb[35].mxu0  ;;  %v956_v59 = vmax.f32 %v880_v50, 0.0  ;;  %v883_v61 = vadd.f32 %v1283_v57, %v1461_v42  ;;  %v874_v63 = vpop.f32.mrb[35].mxu1 }
 0x129   : > { %v918_v60 = vmax.f32 %v728_v51, 0.0  ;;  %v731_v62 = vadd.f32 %v1461_v42, %v730_v58  ;;  %v954_v0 = vmax.f32 %v872_v55, 0.0  ;;  %v875_v2 = vadd.f32 %v1461_v42, %v874_v63 }
 0x12a   : > { %992 = vst [vmem:[%s1468_s28 + $0x110] sm:$0xff] %v920_v54  ;;  %v921_v1 = vmax.f32 %v739_v56, 0.0  ;;  %1028 = vst [vmem:[%s1468_s28 + $0x230] sm:$0xff] %v956_v59  ;;  %v957_v3 = vmax.f32 %v883_v61, 0.0 }
 0x12b   : > { %990 = vst [vmem:[%s1468_s28 + $0x100] sm:$0xff] %v918_v60  ;;  %v919_v4 = vmax.f32 %v731_v62, 0.0  ;;  %1026 = vst [vmem:[%s1468_s28 + $0x220] sm:$0xff] %v954_v0  ;;  %v955_v5 = vmax.f32 %v875_v2, 0.0 }
 0x12c   : > { %993 = vst [vmem:[%s1468_s28 + $0x118] sm:$0xff] %v921_v1  ;;  %1029 = vst [vmem:[%s1468_s28 + $0x238] sm:$0xff] %v957_v3 }
 0x12d   : > { %991 = vst [vmem:[%s1468_s28 + $0x108] sm:$0xff] %v919_v4  ;;  %1027 = vst [vmem:[%s1468_s28 + $0x228] sm:$0xff] %v955_v5 }
 0x12e PF: > { %s13_s12 = sadd.s32 1, %s1341_s12  }
 0x12f   : > { %p10_p4 = scmp.ge.s32.totalorder %s13_s12, 4  }
 0x131   :  { %12 = sbr.rel (!%p10_p4) target bundleno = 1 (0x1), region = 62 }

// kernel: my_model_forward.4
= control target key start
LH: loop header
LB: loop body
LE: loop exit
PB: predicated region body
PF: predicated region fallthrough
CT: control target
= control target key end

     0   :  { %v438_v0 = vmov 0   ;;  %vm186_vm0 = vcmask 179200   ;;  %vm211_vm1 = vcmask 1042432   ;;  %s614_s1 = inlined_call_operand.vmem [shape: bf16[150,128], index: 1, kind: input, shape index: {}]   ;;  %s615_s0 = inlined_call_operand.vmem [shape: bf16[128,150], index: 0, kind: input, shape index: {}]   ;;  %s616_s2 = inlined_call_operand.vmem [shape: f32[1,128], index: 2, kind: input, shape index: {}]   ;;  %s617_s3 = inlined_call_operand.vmem [shape: f32[128,128], index: 3, kind: output, shape index: {}]  }
   0x1   :  { %215 = vmatprep.subr.bf16.mxu0 %v438_v0  ;;  %383 = vmatprep.subr.bf16.mxu1 %v438_v0  ;;  %v404_v1 = vld [vmem:[%s614_s1] sm:$0xff]   ;;  %v405_v2 = vld [vmem:[%s614_s1 + $0x8] sm:$0xff]   ;;  %v406_v3 = vld [vmem:[%s614_s1 + $0x10] sm:$0xff]  }
   0x2   :  { %216 = vmatpush1.bf16.msra.mxu0 %v404_v1  ;;  %393 = vmatpush1.bf16.msra.mxu1 %v404_v1  ;;  %v407_v4 = vld [vmem:[%s614_s1 + $0x18] sm:$0xff]   ;;  %v416_v5 = vld [vmem:[%s615_s0 + $0x4] ss:$8 sps:$4 sm:$0xff]   ;;  %v410_v9 = vld [vmem:[%s614_s1 + $0x30] sm:$0xff]  }
   0x3   :  { %217 = vmatprep.subr.bf16.mxu0 %v438_v0  ;;  %384 = vmatprep.subr.bf16.mxu1 %v438_v0  ;;  %v419_v6 = vld [vmem:[%s615_s0 + $0x44] ss:$8 sps:$4 sm:$0xff]   ;;  %v411_v10 = vld [vmem:[%s614_s1 + $0x38] sm:$0xff]   ;;  %v413_v12 = vld [vmem:[%s614_s1 + $0x48] ss:$0 sps:$4 sm:$0x77]  }
   0x4   :  { %375 = vmatprep.mubr.msk.bf16.mxu0 %vm186_vm0, %v416_v5  ;;  %v408_v7 = vld [vmem:[%s614_s1 + $0x20] sm:$0xff]   ;;  %379 = vmatprep.mubr.msk.bf16.mxu1 %vm186_vm0, %v419_v6  ;;  %v409_v8 = vld [vmem:[%s614_s1 + $0x28] sm:$0xff]   ;;  %v213_v13 = vsel %vm211_vm1, %v413_v12, 0  ;;  %v420_v16 = vld [vmem:[%s615_s0 + $0x14] ss:$8 sps:$4 sm:$0xff]  }
   0x5   :  { %v412_v11 = vld [vmem:[%s614_s1 + $0x40] sm:$0xff]   ;;  %v422_v17 = vld [vmem:[%s615_s0 + $0x54] ss:$8 sps:$4 sm:$0xff]   ;;  %v424_v18 = vld [vmem:[%s615_s0 + $0x10] ss:$8 sps:$4 sm:$0xff]  }
   0x6   :  { %218 = vmatpush1.bf16.msra.mxu0 %v405_v2  ;;  %394 = vmatpush1.bf16.msra.mxu1 %v405_v2  ;;  %v414_v14 = vld [vmem:[%s615_s0] ss:$8 sps:$4 sm:$0xff]   ;;  %v425_v19 = vld [vmem:[%s615_s0 + $0x50] ss:$8 sps:$4 sm:$0xff]   ;;  %v426_v20 = vld [vmem:[%s615_s0 + $0x24] ss:$8 sps:$4 sm:$0xff]  }
   0x7   :  { %219 = vmatprep.subr.bf16.mxu0 %v438_v0  ;;  %385 = vmatprep.subr.bf16.mxu1 %v438_v0  ;;  %v417_v15 = vld [vmem:[%s615_s0 + $0x40] ss:$8 sps:$4 sm:$0xff]   ;;  %v428_v21 = vld [vmem:[%s615_s0 + $0x64] ss:$8 sps:$4 sm:$0xff]   ;;  %v432_v24 = vld [vmem:[%s615_s0 + $0x34] ss:$8 sps:$4 sm:$0xff]  }
   0x8   :  { %v430_v22 = vld [vmem:[%s615_s0 + $0x20] ss:$8 sps:$4 sm:$0xff]   ;;  %v434_v25 = vld [vmem:[%s615_s0 + $0x74] ss:$8 sps:$4 sm:$0xff]   ;;  %v436_v26 = vld [vmem:[%s615_s0 + $0x30] ss:$8 sps:$4 sm:$0xff]  }
   0x9   :  { %v431_v23 = vld [vmem:[%s615_s0 + $0x60] ss:$8 sps:$4 sm:$0xff]   ;;  %v437_v27 = vld [vmem:[%s615_s0 + $0x70] ss:$8 sps:$4 sm:$0xff]  }
   0xa   :  { %220 = vmatpush1.bf16.msra.mxu0 %v406_v3  ;;  %395 = vmatpush1.bf16.msra.mxu1 %v406_v3  ;;  %v548_v28 = vld [vmem:[%s616_s2] ss:$0 sm:$0xff] }
   0xb   :  { %221 = vmatprep.subr.bf16.mxu0 %v438_v0  ;;  %386 = vmatprep.subr.bf16.mxu1 %v438_v0 }
   0xe   :  { %222 = vmatpush1.bf16.msra.mxu0 %v407_v4  ;;  %396 = vmatpush1.bf16.msra.mxu1 %v407_v4 }
   0xf   :  { %223 = vmatprep.subr.bf16.mxu0 %v438_v0  ;;  %387 = vmatprep.subr.bf16.mxu1 %v438_v0 }
  0x12   :  { %224 = vmatpush1.bf16.msra.mxu0 %v408_v7  ;;  %397 = vmatpush1.bf16.msra.mxu1 %v408_v7 }
  0x13   :  { %225 = vmatprep.subr.bf16.mxu0 %v438_v0  ;;  %388 = vmatprep.subr.bf16.mxu1 %v438_v0 }
  0x16   :  { %226 = vmatpush1.bf16.msra.mxu0 %v409_v8  ;;  %398 = vmatpush1.bf16.msra.mxu1 %v409_v8 }
  0x17   :  { %227 = vmatprep.subr.bf16.mxu0 %v438_v0  ;;  %389 = vmatprep.subr.bf16.mxu1 %v438_v0 }
  0x1a   :  { %228 = vmatpush1.bf16.msra.mxu0 %v410_v9  ;;  %399 = vmatpush1.bf16.msra.mxu1 %v410_v9 }
  0x1b   :  { %229 = vmatprep.subr.bf16.mxu0 %v438_v0  ;;  %390 = vmatprep.subr.bf16.mxu1 %v438_v0 }
  0x1e   :  { %230 = vmatpush1.bf16.msra.mxu0 %v411_v10  ;;  %400 = vmatpush1.bf16.msra.mxu1 %v411_v10 }
  0x1f   :  { %231 = vmatprep.subr.bf16.mxu0 %v438_v0  ;;  %391 = vmatprep.subr.bf16.mxu1 %v438_v0 }
  0x22   :  { %232 = vmatpush1.bf16.msra.mxu0 %v412_v11  ;;  %401 = vmatpush1.bf16.msra.mxu1 %v412_v11 }
  0x23   :  { %233 = vmatprep.subr.bf16.mxu0 %v438_v0  ;;  %392 = vmatprep.subr.bf16.mxu1 %v438_v0 }
  0x26   :  { %234 = vmatpush1.bf16.msra.mxu0 %v213_v13  ;;  %402 = vmatpush1.bf16.msra.mxu1 %v213_v13 }
  0x29   :  { %248 = vmatmul.mubr.bf16.vlgmr.msra.gmra.mrb[0].mxu0 %v414_v14  ;;  %280 = vmatmul.mubr.bf16.vlgmr.msra.gmra.mrb[0].mxu1 %v417_v15 }
  0x2a   :  { %376 = vmatprep.mubr.msk.bf16.mxu0 %vm186_vm0, %v420_v16  ;;  %380 = vmatprep.mubr.msk.bf16.mxu1 %vm186_vm0, %v422_v17 }
  0x31   :  { %256 = vmatmul.mubr.bf16.gmra.mrb[4].mxu0 %v424_v18  ;;  %288 = vmatmul.mubr.bf16.gmra.mrb[4].mxu1 %v425_v19 }
  0x32   :  { %377 = vmatprep.mubr.msk.bf16.mxu0 %vm186_vm0, %v426_v20  ;;  %381 = vmatprep.mubr.msk.bf16.mxu1 %vm186_vm0, %v428_v21 }
  0x39   :  { %264 = vmatmul.mubr.bf16.gmra.mrb[8].mxu0 %v430_v22  ;;  %296 = vmatmul.mubr.bf16.gmra.mrb[8].mxu1 %v431_v23 }
  0x3a   :  { %378 = vmatprep.mubr.msk.bf16.mxu0 %vm186_vm0, %v432_v24  ;;  %382 = vmatprep.mubr.msk.bf16.mxu1 %vm186_vm0, %v434_v25 }
  0x41   :  { %272 = vmatmul.mubr.bf16.gmra.mrb[12].mxu0 %v436_v26  ;;  %304 = vmatmul.mubr.bf16.gmra.mrb[12].mxu1 %v437_v27 }
  0xfc   :  { %v249_v29 = vpop.f32.mrb[0].mxu0  ;;  %v281_v30 = vpop.f32.mrb[0].mxu1 }
  0xfd   :  { %v250_v31 = vadd.f32 %v548_v28, %v249_v29  ;;  %v282_v32 = vadd.f32 %v548_v28, %v281_v30  ;;  %v251_v33 = vpop.f32.mrb[1].mxu0  ;;  %v283_v34 = vpop.f32.mrb[1].mxu1 }
  0xfe   :  { %v252_v35 = vpop.f32.mrb[2].mxu0  ;;  %v284_v36 = vpop.f32.mrb[2].mxu1 }
  0xff   :  { %v312_v37 = vmax.f32 %v250_v31, 0.0  ;;  %v320_v38 = vmax.f32 %v282_v32, 0.0  ;;  %v253_v39 = vadd.f32 %v548_v28, %v252_v35  ;;  %v285_v40 = vadd.f32 %v548_v28, %v284_v36  ;;  %v254_v41 = vpop.f32.mrb[3].mxu0  ;;  %v286_v42 = vpop.f32.mrb[3].mxu1 }
 0x101   :  { %328 = vst [vmem:[%s617_s3] sm:$0xff] %v312_v37  ;;  %336 = vst [vmem:[%s617_s3 + $0x40] sm:$0xff] %v320_v38  ;;  %v313_v43 = vmax.f32 %v253_v39, 0.0  ;;  %v321_v44 = vmax.f32 %v285_v40, 0.0 }
 0x103   :  { %329 = vst [vmem:[%s617_s3 + $0x8] sm:$0xff] %v313_v43  ;;  %337 = vst [vmem:[%s617_s3 + $0x48] sm:$0xff] %v321_v44 }
 0x104   :  { %v257_v45 = vpop.f32.mrb[4].mxu0  ;;  %v289_v46 = vpop.f32.mrb[4].mxu1 }
 0x105   :  { %v258_v47 = vadd.f32 %v548_v28, %v257_v45  ;;  %v290_v48 = vadd.f32 %v548_v28, %v289_v46  ;;  %v259_v49 = vpop.f32.mrb[5].mxu0  ;;  %v291_v50 = vpop.f32.mrb[5].mxu1 }
 0x106   :  { %v260_v51 = vpop.f32.mrb[6].mxu0  ;;  %v292_v52 = vpop.f32.mrb[6].mxu1 }
 0x107   :  { %v314_v53 = vmax.f32 %v258_v47, 0.0  ;;  %v322_v54 = vmax.f32 %v290_v48, 0.0  ;;  %v261_v55 = vadd.f32 %v548_v28, %v260_v51  ;;  %v293_v56 = vadd.f32 %v548_v28, %v292_v52  ;;  %v262_v57 = vpop.f32.mrb[7].mxu0  ;;  %v294_v58 = vpop.f32.mrb[7].mxu1 }
 0x109   :  { %330 = vst [vmem:[%s617_s3 + $0x10] sm:$0xff] %v314_v53  ;;  %338 = vst [vmem:[%s617_s3 + $0x50] sm:$0xff] %v322_v54  ;;  %v315_v59 = vmax.f32 %v261_v55, 0.0  ;;  %v323_v60 = vmax.f32 %v293_v56, 0.0 }
 0x10b   :  { %331 = vst [vmem:[%s617_s3 + $0x18] sm:$0xff] %v315_v59  ;;  %339 = vst [vmem:[%s617_s3 + $0x58] sm:$0xff] %v323_v60 }
 0x10c   :  { %v265_v61 = vpop.f32.mrb[8].mxu0  ;;  %v297_v62 = vpop.f32.mrb[8].mxu1 }
 0x10d   :  { %v266_v63 = vadd.f32 %v548_v28, %v265_v61  ;;  %v298_v0 = vadd.f32 %v548_v28, %v297_v62  ;;  %v267_v1 = vpop.f32.mrb[9].mxu0  ;;  %v299_v2 = vpop.f32.mrb[9].mxu1 }
 0x10e   :  { %v268_v3 = vpop.f32.mrb[10].mxu0  ;;  %v300_v4 = vpop.f32.mrb[10].mxu1 }
 0x10f   :  { %v316_v5 = vmax.f32 %v266_v63, 0.0  ;;  %v324_v6 = vmax.f32 %v298_v0, 0.0  ;;  %v269_v7 = vadd.f32 %v548_v28, %v268_v3  ;;  %v301_v8 = vadd.f32 %v548_v28, %v300_v4  ;;  %v270_v9 = vpop.f32.mrb[11].mxu0  ;;  %v302_v10 = vpop.f32.mrb[11].mxu1 }
 0x111   :  { %332 = vst [vmem:[%s617_s3 + $0x20] sm:$0xff] %v316_v5  ;;  %340 = vst [vmem:[%s617_s3 + $0x60] sm:$0xff] %v324_v6  ;;  %v317_v11 = vmax.f32 %v269_v7, 0.0  ;;  %v325_v12 = vmax.f32 %v301_v8, 0.0 }
 0x113   :  { %333 = vst [vmem:[%s617_s3 + $0x28] sm:$0xff] %v317_v11  ;;  %341 = vst [vmem:[%s617_s3 + $0x68] sm:$0xff] %v325_v12 }
 0x114   :  { %v273_v13 = vpop.f32.mrb[12].mxu0  ;;  %v305_v14 = vpop.f32.mrb[12].mxu1 }
 0x115   :  { %v274_v15 = vadd.f32 %v548_v28, %v273_v13  ;;  %v306_v16 = vadd.f32 %v548_v28, %v305_v14  ;;  %v275_v17 = vpop.f32.mrb[13].mxu0  ;;  %v307_v18 = vpop.f32.mrb[13].mxu1 }
 0x116   :  { %v276_v19 = vpop.f32.mrb[14].mxu0  ;;  %v308_v20 = vpop.f32.mrb[14].mxu1 }
 0x117   :  { %v318_v21 = vmax.f32 %v274_v15, 0.0  ;;  %v326_v22 = vmax.f32 %v306_v16, 0.0  ;;  %v277_v23 = vadd.f32 %v548_v28, %v276_v19  ;;  %v309_v24 = vadd.f32 %v548_v28, %v308_v20  ;;  %v278_v25 = vpop.f32.mrb[15].mxu0  ;;  %v310_v26 = vpop.f32.mrb[15].mxu1 }
 0x119   :  { %334 = vst [vmem:[%s617_s3 + $0x30] sm:$0xff] %v318_v21  ;;  %342 = vst [vmem:[%s617_s3 + $0x70] sm:$0xff] %v326_v22  ;;  %v319_v27 = vmax.f32 %v277_v23, 0.0  ;;  %v327_v29 = vmax.f32 %v309_v24, 0.0 }
 0x11b   :  { %335 = vst [vmem:[%s617_s3 + $0x38] sm:$0xff] %v319_v27  ;;  %343 = vst [vmem:[%s617_s3 + $0x78] sm:$0xff] %v327_v29 }

// kernel: my_model_forward.5
= control target key start
LH: loop header
LB: loop body
LE: loop exit
PB: predicated region body
PF: predicated region fallthrough
CT: control target
= control target key end

     0   :  { %v716_v2 = vmov 0.0   ;;  %v85_v10 = vlaneseq  ;;  %v717_v14 = vmov 1966171168   ;;  %s922_s0 = inlined_call_operand.vmem [shape: bf16[2,256], index: 0, kind: input, shape index: {}]   ;;  %s923_s1 = inlined_call_operand.vmem [shape: bf16[256,128], index: 1, kind: input, shape index: {}]   ;;  %s924_s2 = inlined_call_operand.vmem [shape: f32[1,128], index: 2, kind: input, shape index: {}]   ;;  %s925_s3 = inlined_call_operand.vmem [shape: bf16[128,128], index: 3, kind: input, shape index: {}]   ;;  %s926_s4 = inlined_call_operand.vmem [shape: f32[1,128], index: 4, kind: input, shape index: {}]   ;;  %s927_s5 = inlined_call_operand.vmem [shape: bf16[128,128], index: 5, kind: input, shape index: {}]   ;;  %s928_s6 = inlined_call_operand.vmem [shape: f32[1,128], index: 6, kind: input, shape index: {}]   ;;  %s929_s7 = inlined_call_operand.vmem [shape: s32[2,1], index: 7, kind: input, shape index: {}]   ;;  %s930_s8 = inlined_call_operand.hbm [shape: f32[1,1], index: 8, kind: output, shape index: {0}]   ;;  %s931_s9 = inlined_call_operand.vmem [shape: s32[2,1], index: 9, kind: output, shape index: {1}]  }
   0x1   :  { %v656_v0 = vld [vmem:[%s923_s1 + $0x40] sm:$0xff]   ;;  %610 = vmatprep.subr.bf16.mxu1 %v716_v2  ;;  %v658_v3 = vld [vmem:[%s923_s1 + $0x48] sm:$0xff]   ;;  %v660_v5 = vld [vmem:[%s923_s1 + $0x50] sm:$0xff]   ;;  %v83_v15 = vunpack.c.l.s4 %v717_v14 }
   0x2   :  { %v657_v1 = vld [vmem:[%s923_s1] sm:$0xff]   ;;  %570 = vmatprep.subr.bf16.mxu0 %v656_v0  ;;  %v659_v4 = vld [vmem:[%s923_s1 + $0x8] sm:$0xff]   ;;  %v661_v6 = vld [vmem:[%s923_s1 + $0x10] sm:$0xff]   ;;  %v86_v16 = vshrl.u32 %v85_v10, 7 }
   0x3   :  { %571 = vmatpush3.bf16.msra.mxu0 %v657_v1  ;;  %v662_v7 = vld [vmem:[%s923_s1 + $0x58] sm:$0xff]   ;;  %v664_v9 = vld [vmem:[%s923_s1 + $0x60] sm:$0xff]   ;;  %v666_v12 = vld [vmem:[%s923_s1 + $0x68] sm:$0xff]   ;;  %v84_v20 = vunpack.c.0.s8 %v83_v15 }
   0x4   :  { %572 = vmatprep.subr.bf16.mxu0 %v658_v3  ;;  %v663_v8 = vld [vmem:[%s923_s1 + $0x18] sm:$0xff]   ;;  %v665_v11 = vld [vmem:[%s923_s1 + $0x20] sm:$0xff]   ;;  %v667_v18 = vld [vmem:[%s923_s1 + $0x28] sm:$0xff]  }
   0x5   :  { %v535_v13 = vld.sshfl [vmem:[%s922_s0] sm:$0x11 pattern:$0x75316420]  ;;  %v673_v21 = vld [vmem:[%s925_s3 + $0x8] sm:$0xff]   ;;  %v668_v22 = vld [vmem:[%s923_s1 + $0x70] sm:$0xff]   ;;  %v87_v24 = vsub.s32 %v84_v20, %v86_v16 }
   0x6   :  { %v672_v17 = vld [vmem:[%s925_s3] sm:$0xff]   ;;  %v81_v19 = vcombine.high %v535_v13, %v535_v13  ;;  %v669_v23 = vld [vmem:[%s923_s1 + $0x30] sm:$0xff]   ;;  %v670_v25 = vld [vmem:[%s923_s1 + $0x78] sm:$0xff]  }
   0x7   :  { %573 = vmatpush3.bf16.msra.mxu0 %v659_v4  ;;  %611 = vmatpush3.bf16.msra.mxu1 %v672_v17  ;;  %v674_v26 = vld [vmem:[%s925_s3 + $0x10] sm:$0xff]   ;;  %v671_v28 = vld [vmem:[%s923_s1 + $0x38] sm:$0xff]  }
   0x8   :  { %574 = vmatprep.subr.bf16.mxu0 %v660_v5  ;;  %612 = vmatprep.subr.bf16.mxu1 %v716_v2  ;;  %v95_v27 = vrot.slane %v81_v19, %v87_v24  ;;  %v675_v29 = vld [vmem:[%s925_s3 + $0x18] sm:$0xff]  }
   0xa   :  { %226 = vmatprep.mubr.bf16.mxu0 %v95_v27 }
   0xb   :  { %575 = vmatpush3.bf16.msra.mxu0 %v661_v6  ;;  %613 = vmatpush3.bf16.msra.mxu1 %v673_v21 }
   0xc   :  { %576 = vmatprep.subr.bf16.mxu0 %v662_v7  ;;  %614 = vmatprep.subr.bf16.mxu1 %v716_v2 }
   0xf   :  { %577 = vmatpush3.bf16.msra.mxu0 %v663_v8  ;;  %615 = vmatpush3.bf16.msra.mxu1 %v674_v26 }
  0x10   :  { %578 = vmatprep.subr.bf16.mxu0 %v664_v9  ;;  %616 = vmatprep.subr.bf16.mxu1 %v716_v2 }
  0x13   :  { %579 = vmatpush3.bf16.msra.mxu0 %v665_v11 }
  0x14   :  { %580 = vmatprep.subr.bf16.mxu0 %v666_v12 }
  0x17   :  { %581 = vmatpush3.bf16.msra.mxu0 %v667_v18 }
  0x18   :  { %582 = vmatprep.subr.bf16.mxu0 %v668_v22 }
  0x1b   :  { %583 = vmatpush3.bf16.msra.mxu0 %v669_v23 }
  0x1c   :  { %584 = vmatprep.subr.bf16.mxu0 %v670_v25 }
  0x1d   :  { %15 = vsyncpa [#allocation3], 0  ;;  %v88_v30 = vrot.slane %v535_v13, %v87_v24  ;;  %617 = vmatpush3.bf16.msra.mxu1 %v675_v29  ;;  %v676_v31 = vld [vmem:[%s925_s3 + $0x20] sm:$0xff]   ;;  %v677_v32 = vld [vmem:[%s925_s3 + $0x28] sm:$0xff]   ;;  %vm718_vm0 = vmmov 0   ;;  %v719_v60 = vmov 0  }
  0x1e   :  { %618 = vmatprep.subr.bf16.mxu1 %v716_v2  ;;  %v678_v33 = vld [vmem:[%s925_s3 + $0x30] sm:$0xff]   ;;  %v679_v34 = vld [vmem:[%s925_s3 + $0x38] sm:$0xff]   ;;  %626 = vmatprep.mubr.msk.bf16.mxu1 %vm718_vm0, %v716_v2  ;;  %v680_v35 = vld [vmem:[%s927_s5] sm:$0xff]   ;;  %v461_v61 = vand.u32 127, %v85_v10  ;;  %vm464_vm2 = vcmask 1041408   ;;  %vm495_vm6 = vcmask 0  }
  0x1f   :  { %585 = vmatpush3.bf16.msra.mxu0 %v671_v28  ;;  %v681_v36 = vld [vmem:[%s927_s5 + $0x8] sm:$0xff]   ;;  %v682_v37 = vld [vmem:[%s927_s5 + $0x10] sm:$0xff]   ;;  %v683_v38 = vld [vmem:[%s927_s5 + $0x18] sm:$0xff]   ;;  %655 = vset.pattern.permute.xlu0 %v719_v60 }
  0x20   :  { %630 = vmatprep.subr.bf16.mxu0 %v716_v2  ;;  %v684_v39 = vld [vmem:[%s927_s5 + $0x20] sm:$0xff]   ;;  %v685_v40 = vld [vmem:[%s927_s5 + $0x28] sm:$0xff]   ;;  %v686_v50 = vld [vmem:[%s927_s5 + $0x30] sm:$0xff]   ;;  %vm462_vm1 = vcmp.lt.s32.totalorder %v461_v61, 10 }
  0x21   :  { %619 = vmatpush3.bf16.msra.mxu1 %v676_v31  ;;  %v534_v42 = vld [vmem:[%s924_s2] ss:$0 sm:$0xff]  ;;  %v687_v51 = vld [vmem:[%s927_s5 + $0x38] sm:$0xff]  }
  0x22   :  { %227 = vmatmul.mubr.bf16.vlgmr.msra.gmra.mrb[0].mxu0 %v88_v30  ;;  %620 = vmatprep.subr.bf16.mxu1 %v716_v2  ;;  %v552_v52 = vld [vmem:[%s926_s4] ss:$0 sm:$0xff] }
  0x23   :  { %646 = vmatprep.mubr.msk.bf16.mxu0 %vm718_vm0, %v716_v2  ;;  %631 = vmatpush3.bf16.msra.mxu0 %v680_v35  ;;  %v561_v62 = vld [vmem:[%s928_s6] ss:$0 sm:$0xff]  ;;  %s720_s6 = smov [#allocation2]  }
  0x24   :  { %632 = vmatprep.subr.bf16.mxu0 %v716_v2  ;;  %v477_v6 = vld [vmem:[%s929_s7] sm:$0x3]  ;;  %s522_s7 = sshll.u32 %s720_s6, 4  ;;  %s523_s7 = int_to_ptr.vmem [resolvable:$true] %s522_s7 }
  0x25   :  { %621 = vmatpush3.bf16.msra.mxu1 %v677_v32  ;;  %s692_s12 = scalar_lea.vmem %s523_s7, 16  ;;  %s696_s13 = scalar_lea.vmem %s523_s7, 32 }
  0x26   :  { %622 = vmatprep.subr.bf16.mxu1 %v716_v2  ;;  %p693_p0 = scmp.ne.s32.totalorder %s523_s7, %s692_s12  ;;  %p697_p1 = scmp.lt.s32.totalorder %s523_s7, %s523_s7 }
  0x27   :  { %633 = vmatpush3.bf16.msra.mxu0 %v681_v36  ;;  %p698_p2 = scmp.lt.s32.totalorder %s696_s13, %s692_s12 }
  0x28   :  { %634 = vmatprep.subr.bf16.mxu0 %v716_v2 }
  0x29   :  { %623 = vmatpush3.bf16.msra.mxu1 %v678_v33  ;;  %p699_p3 = por %p698_p2, %p697_p1 }
  0x2a   :  { %624 = vmatprep.subr.bf16.mxu1 %v716_v2 }
  0x2b   :  { %635 = vmatpush3.bf16.msra.mxu0 %v682_v37  ;;  %p700_p4 = pnand %p699_p3, %p693_p0 }
  0x2c   :  { %636 = vmatprep.subr.bf16.mxu0 %v716_v2 }
  0x2d   :  { %625 = vmatpush3.bf16.msra.mxu1 %v679_v34 }
  0x2f   :  { %637 = vmatpush3.bf16.msra.mxu0 %v683_v38 }
  0x30   :  { %638 = vmatprep.subr.bf16.mxu0 %v716_v2 }
  0x33   :  { %639 = vmatpush3.bf16.msra.mxu0 %v684_v39 }
  0x34   :  { %640 = vmatprep.subr.bf16.mxu0 %v716_v2 }
  0x37   :  { %641 = vmatpush3.bf16.msra.mxu0 %v685_v40 }
  0x38   :  { %642 = vmatprep.subr.bf16.mxu0 %v716_v2 }
  0x3b   :  { %643 = vmatpush3.bf16.msra.mxu0 %v686_v50 }
  0x3c   :  { %644 = vmatprep.subr.bf16.mxu0 %v716_v2 }
  0x3f   :  { %645 = vmatpush3.bf16.msra.mxu0 %v687_v51 }
  0xf5   :  { %v586_v41 = vpop.f32.mrb[0].mxu0 }
  0xf6   :  { %v587_v43 = vpop.f32.mrb[1].mxu0 }
  0xf7   :  { %v588_v44 = vadd.f32 %v587_v43, %v586_v41  ;;  %v589_v45 = vpop.f32.mrb[2].mxu0 }
  0xf8   :  { %v590_v46 = vpop.f32.mrb[3].mxu0 }
  0xf9   :  { %v229_v47 = vadd.f32 %v588_v44, %v534_v42 }
  0xfb   :  { %v234_v48 = vmax.f32 %v229_v47, 0.0 }
  0xfd   :  { %v235_v49 = vpack.c.bf16 %v234_v48, %v234_v48 }
  0xff   :  { %627 = vmatmul.mubr.bf16.vlgmr.msra.gmra.mrb[0].mxu1 %v235_v49 }
 0x1d2   :  { %v341_v53 = vpop.f32.mrb[0].mxu1 }
 0x1d3   :  { %v342_v54 = vadd.f32 %v552_v52, %v341_v53  ;;  %v628_v55 = vpop.f32.mrb[1].mxu1 }
 0x1d4   :  { %v344_v56 = vpop.f32.mrb[2].mxu1 }
 0x1d5   :  { %v347_v57 = vmax.f32 %v342_v54, 0.0  ;;  %v629_v58 = vpop.f32.mrb[3].mxu1 }
 0x1d7   :  { %v348_v59 = vpack.c.bf16 %v347_v57, %v347_v57 }
 0x1d9   :  { %647 = vmatmul.mubr.bf16.vlgmr.msra.gmra.mrb[4].mxu0 %v348_v59 }
 0x2ac   :  { %v454_v63 = vpop.f32.mrb[4].mxu0 }
 0x2ad   :  { %v455_v0 = vadd.f32 %v561_v62, %v454_v63  ;;  %v648_v1 = vpop.f32.mrb[5].mxu0 }
 0x2ae   :  { %v457_v2 = vpop.f32.mrb[6].mxu0 }
 0x2af   :  { %v463_v3 = vsel %vm462_vm1, %v455_v0, -1e+30  ;;  %v649_v4 = vpop.f32.mrb[7].mxu0 }
 0x2b0   :  { %v465_v5 = vsel %vm464_vm2, %v463_v3, -inf }
 0x2b1   :  { %466 = vmax.xlane.f32.xlu0 %v465_v5 }
 0x2c7   :  { %479 = vperm.xlu0 %655, %v477_v6  }
 0x33e   :  { %v467_v7 = vpop.xlane.xlu0 %466 }
 0x33f   :  { %v468_v8 = vsub.f32 %v463_v3, %v467_v7  ;;  %vm497_vm3 = vcmp.eq.f32.partialorder %v463_v3, %v467_v7 }
 0x340   :  { %v498_v9 = vsel %vm497_vm3, %v461_v61, 128 }
 0x341   :  { %v469_v10 = vmul.f32 1.442695, %v468_v8  ;;  %v499_v11 = vsel %vm464_vm2, %v498_v9, 2147483647 }
 0x342   :  { %v501_v12 = vshra.s32 %v499_v11, 16  ;;  %v500_v19 = vand.u32 65535, %v499_v11 }
 0x343   :  { %688 = vpow2.f32 %v469_v10 }
 0x344   :  { %v503_v13 = vcvt.s32.f32 %v501_v12  ;;  %v502_v21 = vcvt.s32.f32 %v500_v19 }
 0x346   :  { %504 = vmin.xlane.f32.xlu1 %v503_v13  ;;  %v480_v14 = vpop.permute.xlu0 %479 }
 0x347   :  { %vm481_vm4 = vcmp.eq.s32.totalorder %v461_v61, %v480_v14 }
 0x348   :  { %v482_v17 = vsel %vm481_vm4, %v463_v3, 0.0 }
 0x349   :  { %v483_v18 = vsel %vm464_vm2, %v482_v17, 0.0 }
 0x34d   :  { %v689_v15 = vpop.eup %688 }
 0x34e   :  { %v471_v16 = vsel %vm464_vm2, %v689_v15, 0.0 }
 0x34f   :  { %472 = vadd.xlane.f32.xlu1 %v471_v16 }
 0x353   :  { %484 = vadd.xlane.f32.xlu1 %v483_v18 }
 0x3d3   :  { %v505_v20 = vpop.xlane.xlu1 %504 }
 0x3d4   :  { %vm506_vm5 = vcmp.eq.f32.partialorder %v503_v13, %v505_v20 }
 0x3d5   :  { %v507_v22 = vsel %vm506_vm5, %v502_v21, inf }
 0x3d6   :  { %508 = vmin.xlane.f32.xlu1 %v507_v22 }
 0x3dc   :  { %v473_v23 = vpop.xlane.xlu1 %472 }
 0x3dd   :  { %690 = vlog2.f32 %v473_v23 }
 0x3e0   :  { %v485_v27 = vpop.xlane.xlu1 %484 }
 0x3e7   :  { %v691_v24 = vpop.eup %690 }
 0x3e8   :  { %v475_v25 = vmul.f32 0.6931472, %v691_v24 }
 0x3ea   :  { %v476_v26 = vadd.f32 %v475_v25, %v467_v7 }
 0x3ec   :  { %v486_v28 = vsub.f32 %v476_v26, %v485_v27 }
 0x3ee   :  { %v487_v29 = vsel %vm464_vm2, %v486_v28, 0.0 }
 0x3ef   :  { %v488_v30 = vrot.slane %v487_v29, 4 }
 0x3f1   :  { %v489_v31 = vadd.f32 %v488_v30, %v487_v29 }
 0x3f3   :  { %v490_v32 = vrot.slane %v489_v31, 2 }
 0x3f5   :  { %v491_v33 = vadd.f32 %v490_v32, %v489_v31 }
 0x3f7   :  { %v492_v34 = vrot.slane %v491_v33, 1 }
 0x3f9   :  { %v493_v35 = vadd.f32 %v492_v34, %v491_v33 }
 0x3fb   :  { %v494_v36 = vmul.f32 0.5, %v493_v35 }
 0x3fd   :  { %496 = vst.msk [vmem:[#allocation2] sm:$0x1] %vm495_vm6, %v494_v36 }
 0x3fe   :  { %703 = shalt.err (!%p700_p4)
}
 0x3ff   :  { %s704_s16 = scalar_lea.hbm %s930_s8, 16 }
 0x400   :  { %p705_p5 = scmp.ne.s32.totalorder %s930_s8, %s704_s16  ;;  %p708_p6 = scmp.lt.u32.totalorder %s704_s16, %s930_s8 }
 0x402   :  { %p710_p7 = pnand %p708_p6, %p705_p5 }
 0x404   :  { %713 = shalt.err (!%p710_p7)
}
 0x405   :  { %525 = dma.vmem_to_hbm [thread:$0]  %s523_s7, 16, %s930_s8, [#allocation3]   ;;  %v511_v37 = vcvt.f32.s32 %v505_v20  ;;  %vm514_vm7 = vcmask 1024  }
 0x407   :  { %v512_v39 = vshll.u32 %v511_v37, 16 }
 0x463   :  { %v509_v38 = vpop.xlane.xlu1 %508 }
 0x464   :  { %v510_v40 = vcvt.f32.s32 %v509_v38 }
 0x466   :  { %v513_v41 = vadd.s32 %v512_v39, %v510_v40 }
 0x468   :  { %515 = vst.msk [vmem:[%s931_s9] sm:$0x3] %vm514_vm7, %v513_v41 }
 0x469   :  { %714 = dma.done.wait [#allocation3], 16  }
 0x46a   :  { %715 = vsyncadd [#allocation3], 4294967280 }
 0x46b   :  { %533 = vsyncpa [#allocation3], 1 }

</bundles_post_ra>
